<compile_context>
chip_gen: v5e
topology: v5e:2x2
jax: 0.10.0
libtpu: 0.0.40
codegen_flags: <defaults>
</compile_context>

<pallas_src>
import functools

import numpy as np

import jax
import jax.numpy as jnp
from jax import lax
from jax.experimental import pallas as pl
from jax.experimental.pallas import tpu as pltpu


# ------------------------- Pallas kernel ------------------------------------
def _tree_lstm_kernel(n_nodes, embed_dim, hidden_size,
                      # scalar-prefetch refs (SMEM): child indices
                      # (missing child already remapped to the sentinel row N)
                      left_ref, right_ref,
                      # VMEM inputs
                      x_ref,      # (N, E)   node embeddings (post-order)
                      wx_ref,     # (E, 5H)  fused [W_iou | W_f]
                      ul_ref,     # (H, 5H)  left-child rows of [U_iou | U_f]
                      ur_ref,     # (H, 5H)  right-child rows of [U_iou | U_f]
                      b_ref,      # (1, 5H)  fused biases
                      # outputs (root state)
                      h_out_ref, c_out_ref,
                      # scratch
                      h_buf, c_buf,   # (N+1, H): per-node states + zero row
                      xw_buf):        # (N, 5H):  hoisted x-projection
    N, E, H = n_nodes, embed_dim, hidden_size
    del E  # only used via x_ref/wx_ref shapes

    # ---- Hoisted, tree-independent x-projection: one batched MXU matmul ----
    # (bias folded in here, so the per-node loop has no bias add at all).
    xw_buf[...] = (jnp.dot(x_ref[...], wx_ref[...],
                           preferred_element_type=jnp.float32) + b_ref[...])

    # Zero the sentinel row (index N) used by missing children (leaf nodes).
    zero_row = jnp.zeros((1, H), jnp.float32)
    h_buf[pl.ds(N, 1), :] = zero_row
    c_buf[pl.ds(N, 1), :] = zero_row

    # ---- Serial post-order walk: only the recurrent part per node ----------
    def node_step(n, carry):
        li = left_ref[n]
        ri = right_ref[n]

        h_l = h_buf[pl.ds(li, 1), :]          # (1, H)
        h_r = h_buf[pl.ds(ri, 1), :]          # (1, H)

        pre = (xw_buf[pl.ds(n, 1), :]
               + jnp.dot(h_l, ul_ref[...], preferred_element_type=jnp.float32)
               + jnp.dot(h_r, ur_ref[...], preferred_element_type=jnp.float32))

        gates = jax.nn.sigmoid(pre)           # sigmoid over all 5H gates
        i_g = gates[:, 0:H]
        o_g = gates[:, H:2 * H]
        u_g = jnp.tanh(gates[:, 2 * H:3 * H])  # torch: u = tanh(sigmoid(u_pre))
        f_l = gates[:, 3 * H:4 * H]
        f_r = gates[:, 4 * H:5 * H]
        # TODO(synk): gate lane-slices above are sub-128-lane extracts; fix the
        # layout (128-lane-aligned gate groups) as part of the level-batched
        # formulation rather than paying 4x weight width now.

        c = (i_g * u_g
             + f_l * c_buf[pl.ds(li, 1), :]
             + f_r * c_buf[pl.ds(ri, 1), :])
        h = o_g * jnp.tanh(c)

        h_buf[pl.ds(n, 1), :] = h
        c_buf[pl.ds(n, 1), :] = c
        return carry

    # unroll=True: small/medium N fully unrolls, giving the scheduler
    # visibility across node boundaries.  For very large N switch to a
    # partial unroll factor (e.g. 4) to bound code size.
    lax.fori_loop(0, N, node_step, 0, unroll=True)

    # Root is the last post-order node; store outputs exactly once.
    h_out_ref[...] = h_buf[pl.ds(N - 1, 1), :]
    c_out_ref[...] = c_buf[pl.ds(N - 1, 1), :]


# ------------------------- VMEM budget --------------------------------------
def _vmem_budget_bytes(N, E, H):
    """Explicit scoped-VMEM request (v5e default is only 16 MiB)."""
    f32 = 4
    words = (N * E + E * 5 * H + 2 * H * 5 * H + 5 * H        # inputs
             + 2 * (N + 1) * H + N * 5 * H                    # scratch
             + 2 * H)                                         # outputs
    # 2x margin for double buffering + internal scratch; clamp to stay safely
    # under v7x's 64 MiB physical VMEM even for very large trees.
    return int(min(max(2 * words * f32 + (4 << 20), 16 << 20), 48 << 20))


# ------------------------- wrapper ------------------------------------------
def tree_lstm_encode(left_idx, right_idx, x_all, params):
    """Encode a flattened (strict post-order) binary tree. Returns root (h, c).

    Contract: children indices are < their parent's index (strict post-order)
    and the root is node N-1; -1 marks a missing child (leaf).  Unary nodes
    pass the same child index on both sides.
    """
    N, E = x_all.shape
    H = params["W_iou"].shape[1] // 3

    # Post-order sanity check (only possible when indices are concrete).
    try:
        ln, rn = np.asarray(left_idx), np.asarray(right_idx)
    except Exception:   # traced under jit -> trust the caller
        ln = rn = None
    if ln is not None:
        nodes = np.arange(N)
        if not (np.all(ln < nodes) and np.all(rn < nodes)):
            raise ValueError("left/right indices must be strict post-order "
                             "(children before parents, root last)")

    # Host-side fusion of the four Linear layers:
    #   wx  = [W_iou | W_f]                 (E, 5H)   -> hoisted x-projection
    #   U   = [U_iou | U_f]                 (2H, 5H)  -> split into U_l / U_r
    #   b   = [b_iou+b_Uiou | b_f+b_Uf]     (1, 5H)   -> folded into xW
    wx = jnp.concatenate([params["W_iou"], params["W_f"]],
                         axis=1).astype(jnp.float32)
    u_cat = jnp.concatenate([params["U_iou"], params["U_f"]],
                            axis=1).astype(jnp.float32)
    u_l = u_cat[:H]
    u_r = u_cat[H:]
    b = jnp.concatenate([params["b_iou"] + params["b_Uiou"],
                         params["b_f"] + params["b_Uf"]],
                        axis=1).astype(jnp.float32)

    # Missing child (-1) -> sentinel zero-state row N.
    left = jnp.where(left_idx < 0, N, left_idx).astype(jnp.int32)
    right = jnp.where(right_idx < 0, N, right_idx).astype(jnp.int32)

    x2 = x_all.astype(jnp.float32)           # (N, E), flat 2D layout

    kernel = functools.partial(_tree_lstm_kernel, N, E, H)

    h, c = pl.pallas_call(
        kernel,
        out_shape=(jax.ShapeDtypeStruct((1, H), jnp.float32),
                   jax.ShapeDtypeStruct((1, H), jnp.float32)),
        grid_spec=pltpu.PrefetchScalarGridSpec(
            num_scalar_prefetch=2,           # left, right -> SMEM
            grid=(1,),                       # single invocation; loop inside
            in_specs=[pl.BlockSpec((N, E), lambda i, *_: (0, 0)),
                      pl.BlockSpec((E, 5 * H), lambda i, *_: (0, 0)),
                      pl.BlockSpec((H, 5 * H), lambda i, *_: (0, 0)),
                      pl.BlockSpec((H, 5 * H), lambda i, *_: (0, 0)),
                      pl.BlockSpec((1, 5 * H), lambda i, *_: (0, 0))],
            out_specs=(pl.BlockSpec((1, H), lambda i, *_: (0, 0)),
                       pl.BlockSpec((1, H), lambda i, *_: (0, 0))),
            scratch_shapes=[pltpu.VMEM((N + 1, H), jnp.float32),   # h states
                            pltpu.VMEM((N + 1, H), jnp.float32),   # c states
                            pltpu.VMEM((N, 5 * H), jnp.float32)]),  # xW + b
        compiler_params=pltpu.CompilerParams(
            dimension_semantics=("arbitrary",),
            vmem_limit_bytes=_vmem_budget_bytes(N, E, H)),
    )(left, right, x2, wx, u_l, u_r, b)
    return h, c


# ------------------------- pure-JAX reference --------------------------------
def tree_lstm_reference(left_idx, right_idx, x_all, params, H):
    N = x_all.shape[0]
    hs, cs = [], []
    zero = jnp.zeros((1, H), jnp.float32)
    for n in range(N):
        x = x_all[n:n + 1]
        li, ri = int(left_idx[n]), int(right_idx[n])
        h_l, c_l = (hs[li], cs[li]) if li >= 0 else (zero, zero)
        h_r, c_r = (hs[ri], cs[ri]) if ri >= 0 else (zero, zero)
        h_cat = jnp.concatenate([h_l, h_r], axis=1)
        iou = (x @ params["W_iou"] + params["b_iou"]
               + h_cat @ params["U_iou"] + params["b_Uiou"])
        iou_s = jax.nn.sigmoid(iou)
        i_g, o_g, u_g = iou_s[:, :H], iou_s[:, H:2 * H], jnp.tanh(iou_s[:, 2 * H:])
        f = (x @ params["W_f"] + params["b_f"]
             + h_cat @ params["U_f"] + params["b_Uf"])
        f_s = jax.nn.sigmoid(f)
        f_l, f_r = f_s[:, :H], f_s[:, H:]
        c = i_g * u_g + f_l * c_l + f_r * c_r
        h = o_g * jnp.tanh(c)
        hs.append(h)
        cs.append(c)
    return hs[-1], cs[-1]


# ------------------------- main ----------------------------------------------
if __name__ == "__main__":
    vocab_size, embedding_dim, hidden_size = 20, 32, 32
    E, H = embedding_dim, hidden_size

    key = jax.random.PRNGKey(0)
    ks = jax.random.split(key, 10)

    # deterministic parameter init (synthetic, not a checkpoint);
    # Linear weights stored pre-transposed as [in_features, out_features]
    embedding = jax.random.normal(ks[0], (vocab_size, E), jnp.float32) * 0.1
    embedding = embedding.at[0].set(0.0)                 # padding_idx=0
    params = {
        "W_iou":  jax.random.normal(ks[1], (E, 3 * H), jnp.float32) * 0.1,
        "b_iou":  jax.random.normal(ks[2], (1, 3 * H), jnp.float32) * 0.1,
        "U_iou":  jax.random.normal(ks[3], (2 * H, 3 * H), jnp.float32) * 0.1,
        "b_Uiou": jax.random.normal(ks[4], (1, 3 * H), jnp.float32) * 0.1,
        "W_f":    jax.random.normal(ks[5], (E, 2 * H), jnp.float32) * 0.1,
        "b_f":    jax.random.normal(ks[6], (1, 2 * H), jnp.float32) * 0.1,
        "U_f":    jax.random.normal(ks[7], (2 * H, 2 * H), jnp.float32) * 0.1,
        "b_Uf":   jax.random.normal(ks[8], (1, 2 * H), jnp.float32) * 0.1,
    }

    # A small formula tree, flattened in post-order.
    # node: 0     1     2(bin:0,1)  3     4(unary:3)  5(bin:2,4)  6(root unary:5)
    tokens    = jnp.array([3, 5, 7, 2, 4, 6, 1], dtype=jnp.int32)
    left_idx  = jnp.array([-1, -1, 0, -1, 3, 2, 5], dtype=jnp.int32)
    right_idx = jnp.array([-1, -1, 1, -1, 3, 4, 5], dtype=jnp.int32)
    # (-1, -1) => leaf (zero child states); (c, c) => unary node.

    # embedding lookup is glue (plain JAX gather)
    x_all = embedding[tokens]                            # (N, E) float32

    h_root, c_root = tree_lstm_encode(left_idx, right_idx, x_all, params)
    jax.block_until_ready((h_root, c_root))

    h_ref, c_ref = tree_lstm_reference(left_idx, right_idx, x_all, params, H)
    assert jnp.allclose(h_root, h_ref, atol=1e-5, rtol=1e-5), (h_root, h_ref)
    assert jnp.allclose(c_root, c_ref, atol=1e-5, rtol=1e-5), (c_root, c_ref)

    print("KERNEL_OK")
</pallas_src>

<mosaic_0001>
module attributes {stable_mosaic.version = 11 : i64} {
  func.func @_tree_lstm_kernel(%arg0: i32, %arg1: memref<7xi32, #tpu.memory_space<smem>>, %arg2: memref<7xi32, #tpu.memory_space<smem>>, %arg3: memref<7x32xf32, #tpu.memory_space<vmem>>, %arg4: memref<32x160xf32, #tpu.memory_space<vmem>>, %arg5: memref<32x160xf32, #tpu.memory_space<vmem>>, %arg6: memref<32x160xf32, #tpu.memory_space<vmem>>, %arg7: memref<1x160xf32, #tpu.memory_space<vmem>>, %arg8: memref<1x32xf32, #tpu.memory_space<vmem>>, %arg9: memref<1x32xf32, #tpu.memory_space<vmem>>, %arg10: memref<8x32xf32, #tpu.memory_space<vmem>>, %arg11: memref<8x32xf32, #tpu.memory_space<vmem>>, %arg12: memref<7x160xf32, #tpu.memory_space<vmem>>) attributes {dimension_semantics = [#tpu.dimension_semantics<arbitrary>], iteration_bounds = array<i64: 1>, scalar_prefetch = 2 : i64, scratch_operands = 3 : i64, tpu.core_type = #tpu.core_type<tc>, window_params = [{pipeline_mode = #tpu.pipeline_mode<synchronous>, transform_indices = @transform_0, window_bounds = array<i64: 7, 32>}, {pipeline_mode = #tpu.pipeline_mode<synchronous>, transform_indices = @transform_1, window_bounds = array<i64: 32, 160>}, {pipeline_mode = #tpu.pipeline_mode<synchronous>, transform_indices = @transform_2, window_bounds = array<i64: 32, 160>}, {pipeline_mode = #tpu.pipeline_mode<synchronous>, transform_indices = @transform_3, window_bounds = array<i64: 32, 160>}, {pipeline_mode = #tpu.pipeline_mode<synchronous>, transform_indices = @transform_4, window_bounds = array<i64: 1, 160>}, {pipeline_mode = #tpu.pipeline_mode<synchronous>, transform_indices = @transform_5, window_bounds = array<i64: 1, 32>}, {pipeline_mode = #tpu.pipeline_mode<synchronous>, transform_indices = @transform_6, window_bounds = array<i64: 1, 32>}]} {
    %c0 = arith.constant 0 : index
    %c0_0 = arith.constant 0 : index
    %0 = vector.load %arg3[%c0, %c0_0] : memref<7x32xf32, #tpu.memory_space<vmem>>, vector<7x32xf32>
    %c0_1 = arith.constant 0 : index
    %c0_2 = arith.constant 0 : index
    %1 = vector.load %arg4[%c0_1, %c0_2] : memref<32x160xf32, #tpu.memory_space<vmem>>, vector<32x160xf32>
    %cst = arith.constant dense<0.000000e+00> : vector<7x160xf32>
    %2 = tpu.matmul %0, %1, %cst {dimension_numbers = #tpu.dot_dimension_numbers<[1], [0], [0], [1], [0, 0, 1, 1], [], []>} : vector<7x32xf32>, vector<32x160xf32>, vector<7x160xf32> -> vector<7x160xf32>
    %c0_3 = arith.constant 0 : index
    %c0_4 = arith.constant 0 : index
    %3 = vector.load %arg7[%c0_3, %c0_4] : memref<1x160xf32, #tpu.memory_space<vmem>>, vector<1x160xf32>
    %4 = vector.broadcast %3 : vector<1x160xf32> to vector<7x160xf32>
    %5 = arith.addf %2, %4 : vector<7x160xf32>
    %c0_5 = arith.constant 0 : index
    %c0_6 = arith.constant 0 : index
    %6 = vector.load %arg12[%c0_5, %c0_6] : memref<7x160xf32, #tpu.memory_space<vmem>>, vector<7x160xf32>
    tpu.vector_store %arg12[%c0_5, %c0_6], %5 {strides = array<i32>} : memref<7x160xf32, #tpu.memory_space<vmem>>, vector<7x160xf32>,
    %cst_7 = arith.constant 0.000000e+00 : f32
    %7 = vector.broadcast %cst_7 : f32 to vector<1x32xf32>
    %c7 = arith.constant 7 : index
    %c0_8 = arith.constant 0 : index
    %8 = vector.load %arg10[%c7, %c0_8] : memref<8x32xf32, #tpu.memory_space<vmem>>, vector<1x32xf32>
    tpu.vector_store %arg10[%c7, %c0_8], %7 {strides = array<i32>} : memref<8x32xf32, #tpu.memory_space<vmem>>, vector<1x32xf32>,
    %c7_9 = arith.constant 7 : index
    %c0_10 = arith.constant 0 : index
    %9 = vector.load %arg11[%c7_9, %c0_10] : memref<8x32xf32, #tpu.memory_space<vmem>>, vector<1x32xf32>
    tpu.vector_store %arg11[%c7_9, %c0_10], %7 {strides = array<i32>} : memref<8x32xf32, #tpu.memory_space<vmem>>, vector<1x32xf32>,
    %c0_i32 = arith.constant 0 : i32
    %10 = arith.index_cast %c0_i32 : i32 to index
    %11 = memref.load %arg1[%10] : memref<7xi32, #tpu.memory_space<smem>>
    %12 = arith.index_cast %c0_i32 : i32 to index
    %13 = memref.load %arg2[%12] : memref<7xi32, #tpu.memory_space<smem>>
    %14 = arith.index_cast %11 : i32 to index
    %c0_11 = arith.constant 0 : index
    %15 = vector.load %arg10[%14, %c0_11] : memref<8x32xf32, #tpu.memory_space<vmem>>, vector<1x32xf32>
    %16 = arith.index_cast %13 : i32 to index
    %c0_12 = arith.constant 0 : index
    %17 = vector.load %arg10[%16, %c0_12] : memref<8x32xf32, #tpu.memory_space<vmem>>, vector<1x32xf32>
    %18 = arith.index_cast %c0_i32 : i32 to index
    %c0_13 = arith.constant 0 : index
    %19 = vector.load %arg12[%18, %c0_13] : memref<7x160xf32, #tpu.memory_space<vmem>>, vector<1x160xf32>
    %c0_14 = arith.constant 0 : index
    %c0_15 = arith.constant 0 : index
    %20 = vector.load %arg5[%c0_14, %c0_15] : memref<32x160xf32, #tpu.memory_space<vmem>>, vector<32x160xf32>
    %cst_16 = arith.constant dense<0.000000e+00> : vector<1x160xf32>
    %21 = tpu.matmul %15, %20, %cst_16 {dimension_numbers = #tpu.dot_dimension_numbers<[1], [0], [0], [1], [0, 0, 1, 1], [], []>} : vector<1x32xf32>, vector<32x160xf32>, vector<1x160xf32> -> vector<1x160xf32>
    %22 = arith.addf %19, %21 : vector<1x160xf32>
    %c0_17 = arith.constant 0 : index
    %c0_18 = arith.constant 0 : index
    %23 = vector.load %arg6[%c0_17, %c0_18] : memref<32x160xf32, #tpu.memory_space<vmem>>, vector<32x160xf32>
    %cst_19 = arith.constant dense<0.000000e+00> : vector<1x160xf32>
    %24 = tpu.matmul %17, %23, %cst_19 {dimension_numbers = #tpu.dot_dimension_numbers<[1], [0], [0], [1], [0, 0, 1, 1], [], []>} : vector<1x32xf32>, vector<32x160xf32>, vector<1x160xf32> -> vector<1x160xf32>
    %25 = arith.addf %22, %24 : vector<1x160xf32>
    %26 = arith.negf %25 : vector<1x160xf32>
    %27 = math.exp %26 : vector<1x160xf32>
    %cst_20 = arith.constant 1.000000e+00 : f32
    %28 = vector.broadcast %cst_20 : f32 to vector<1x160xf32>
    %29 = arith.addf %28, %27 : vector<1x160xf32>
    %30 = arith.divf %28, %29 : vector<1x160xf32>
    %31 = vector.extract_strided_slice %30 {offsets = [0, 0], sizes = [1, 32], strides = [1, 1]} : vector<1x160xf32> to vector<1x32xf32>
    %32 = vector.extract_strided_slice %30 {offsets = [0, 32], sizes = [1, 32], strides = [1, 1]} : vector<1x160xf32> to vector<1x32xf32>
    %33 = vector.extract_strided_slice %30 {offsets = [0, 64], sizes = [1, 32], strides = [1, 1]} : vector<1x160xf32> to vector<1x32xf32>
    %34 = math.tanh %33 : vector<1x32xf32>
    %35 = vector.extract_strided_slice %30 {offsets = [0, 96], sizes = [1, 32], strides = [1, 1]} : vector<1x160xf32> to vector<1x32xf32>
    %36 = vector.extract_strided_slice %30 {offsets = [0, 128], sizes = [1, 32], strides = [1, 1]} : vector<1x160xf32> to vector<1x32xf32>
    %37 = arith.mulf %31, %34 : vector<1x32xf32>
    %38 = arith.index_cast %11 : i32 to index
    %c0_21 = arith.constant 0 : index
    %39 = vector.load %arg11[%38, %c0_21] : memref<8x32xf32, #tpu.memory_space<vmem>>, vector<1x32xf32>
    %40 = arith.mulf %35, %39 : vector<1x32xf32>
    %41 = arith.addf %37, %40 : vector<1x32xf32>
    %42 = arith.index_cast %13 : i32 to index
    %c0_22 = arith.constant 0 : index
    %43 = vector.load %arg11[%42, %c0_22] : memref<8x32xf32, #tpu.memory_space<vmem>>, vector<1x32xf32>
    %44 = arith.mulf %36, %43 : vector<1x32xf32>
    %45 = arith.addf %41, %44 : vector<1x32xf32>
    %46 = math.tanh %45 : vector<1x32xf32>
    %47 = arith.mulf %32, %46 : vector<1x32xf32>
    %48 = arith.index_cast %c0_i32 : i32 to index
    %c0_23 = arith.constant 0 : index
    %49 = vector.load %arg10[%48, %c0_23] : memref<8x32xf32, #tpu.memory_space<vmem>>, vector<1x32xf32>
    tpu.vector_store %arg10[%48, %c0_23], %47 {strides = array<i32>} : memref<8x32xf32, #tpu.memory_space<vmem>>, vector<1x32xf32>,
    %50 = arith.index_cast %c0_i32 : i32 to index
    %c0_24 = arith.constant 0 : index
    %51 = vector.load %arg11[%50, %c0_24] : memref<8x32xf32, #tpu.memory_space<vmem>>, vector<1x32xf32>
    tpu.vector_store %arg11[%50, %c0_24], %45 {strides = array<i32>} : memref<8x32xf32, #tpu.memory_space<vmem>>, vector<1x32xf32>,
    %c1_i32 = arith.constant 1 : i32
    %52 = arith.index_cast %c1_i32 : i32 to index
    %53 = memref.load %arg1[%52] : memref<7xi32, #tpu.memory_space<smem>>
    %54 = arith.index_cast %c1_i32 : i32 to index
    %55 = memref.load %arg2[%54] : memref<7xi32, #tpu.memory_space<smem>>
    %56 = arith.index_cast %53 : i32 to index
    %c0_25 = arith.constant 0 : index
    %57 = vector.load %arg10[%56, %c0_25] : memref<8x32xf32, #tpu.memory_space<vmem>>, vector<1x32xf32>
    %58 = arith.index_cast %55 : i32 to index
    %c0_26 = arith.constant 0 : index
    %59 = vector.load %arg10[%58, %c0_26] : memref<8x32xf32, #tpu.memory_space<vmem>>, vector<1x32xf32>
    %60 = arith.index_cast %c1_i32 : i32 to index
    %c0_27 = arith.constant 0 : index
    %61 = vector.load %arg12[%60, %c0_27] : memref<7x160xf32, #tpu.memory_space<vmem>>, vector<1x160xf32>
    %c0_28 = arith.constant 0 : index
    %c0_29 = arith.constant 0 : index
    %62 = vector.load %arg5[%c0_28, %c0_29] : memref<32x160xf32, #tpu.memory_space<vmem>>, vector<32x160xf32>
    %cst_30 = arith.constant dense<0.000000e+00> : vector<1x160xf32>
    %63 = tpu.matmul %57, %62, %cst_30 {dimension_numbers = #tpu.dot_dimension_numbers<[1], [0], [0], [1], [0, 0, 1, 1], [], []>} : vector<1x32xf32>, vector<32x160xf32>, vector<1x160xf32> -> vector<1x160xf32>
    %64 = arith.addf %61, %63 : vector<1x160xf32>
    %c0_31 = arith.constant 0 : index
    %c0_32 = arith.constant 0 : index
    %65 = vector.load %arg6[%c0_31, %c0_32] : memref<32x160xf32, #tpu.memory_space<vmem>>, vector<32x160xf32>
    %cst_33 = arith.constant dense<0.000000e+00> : vector<1x160xf32>
    %66 = tpu.matmul %59, %65, %cst_33 {dimension_numbers = #tpu.dot_dimension_numbers<[1], [0], [0], [1], [0, 0, 1, 1], [], []>} : vector<1x32xf32>, vector<32x160xf32>, vector<1x160xf32> -> vector<1x160xf32>
    %67 = arith.addf %64, %66 : vector<1x160xf32>
    %68 = arith.negf %67 : vector<1x160xf32>
    %69 = math.exp %68 : vector<1x160xf32>
    %cst_34 = arith.constant 1.000000e+00 : f32
    %70 = vector.broadcast %cst_34 : f32 to vector<1x160xf32>
    %71 = arith.addf %70, %69 : vector<1x160xf32>
    %72 = arith.divf %70, %71 : vector<1x160xf32>
    %73 = vector.extract_strided_slice %72 {offsets = [0, 0], sizes = [1, 32], strides = [1, 1]} : vector<1x160xf32> to vector<1x32xf32>
    %74 = vector.extract_strided_slice %72 {offsets = [0, 32], sizes = [1, 32], strides = [1, 1]} : vector<1x160xf32> to vector<1x32xf32>
    %75 = vector.extract_strided_slice %72 {offsets = [0, 64], sizes = [1, 32], strides = [1, 1]} : vector<1x160xf32> to vector<1x32xf32>
    %76 = math.tanh %75 : vector<1x32xf32>
    %77 = vector.extract_strided_slice %72 {offsets = [0, 96], sizes = [1, 32], strides = [1, 1]} : vector<1x160xf32> to vector<1x32xf32>
    %78 = vector.extract_strided_slice %72 {offsets = [0, 128], sizes = [1, 32], strides = [1, 1]} : vector<1x160xf32> to vector<1x32xf32>
    %79 = arith.mulf %73, %76 : vector<1x32xf32>
    %80 = arith.index_cast %53 : i32 to index
    %c0_35 = arith.constant 0 : index
    %81 = vector.load %arg11[%80, %c0_35] : memref<8x32xf32, #tpu.memory_space<vmem>>, vector<1x32xf32>
    %82 = arith.mulf %77, %81 : vector<1x32xf32>
    %83 = arith.addf %79, %82 : vector<1x32xf32>
    %84 = arith.index_cast %55 : i32 to index
    %c0_36 = arith.constant 0 : index
    %85 = vector.load %arg11[%84, %c0_36] : memref<8x32xf32, #tpu.memory_space<vmem>>, vector<1x32xf32>
    %86 = arith.mulf %78, %85 : vector<1x32xf32>
    %87 = arith.addf %83, %86 : vector<1x32xf32>
    %88 = math.tanh %87 : vector<1x32xf32>
    %89 = arith.mulf %74, %88 : vector<1x32xf32>
    %90 = arith.index_cast %c1_i32 : i32 to index
    %c0_37 = arith.constant 0 : index
    %91 = vector.load %arg10[%90, %c0_37] : memref<8x32xf32, #tpu.memory_space<vmem>>, vector<1x32xf32>
    tpu.vector_store %arg10[%90, %c0_37], %89 {strides = array<i32>} : memref<8x32xf32, #tpu.memory_space<vmem>>, vector<1x32xf32>,
    %92 = arith.index_cast %c1_i32 : i32 to index
    %c0_38 = arith.constant 0 : index
    %93 = vector.load %arg11[%92, %c0_38] : memref<8x32xf32, #tpu.memory_space<vmem>>, vector<1x32xf32>
    tpu.vector_store %arg11[%92, %c0_38], %87 {strides = array<i32>} : memref<8x32xf32, #tpu.memory_space<vmem>>, vector<1x32xf32>,
    %c2_i32 = arith.constant 2 : i32
    %94 = arith.index_cast %c2_i32 : i32 to index
    %95 = memref.load %arg1[%94] : memref<7xi32, #tpu.memory_space<smem>>
    %96 = arith.index_cast %c2_i32 : i32 to index
    %97 = memref.load %arg2[%96] : memref<7xi32, #tpu.memory_space<smem>>
    %98 = arith.index_cast %95 : i32 to index
    %c0_39 = arith.constant 0 : index
    %99 = vector.load %arg10[%98, %c0_39] : memref<8x32xf32, #tpu.memory_space<vmem>>, vector<1x32xf32>
    %100 = arith.index_cast %97 : i32 to index
    %c0_40 = arith.constant 0 : index
    %101 = vector.load %arg10[%100, %c0_40] : memref<8x32xf32, #tpu.memory_space<vmem>>, vector<1x32xf32>
    %102 = arith.index_cast %c2_i32 : i32 to index
    %c0_41 = arith.constant 0 : index
    %103 = vector.load %arg12[%102, %c0_41] : memref<7x160xf32, #tpu.memory_space<vmem>>, vector<1x160xf32>
    %c0_42 = arith.constant 0 : index
    %c0_43 = arith.constant 0 : index
    %104 = vector.load %arg5[%c0_42, %c0_43] : memref<32x160xf32, #tpu.memory_space<vmem>>, vector<32x160xf32>
    %cst_44 = arith.constant dense<0.000000e+00> : vector<1x160xf32>
    %105 = tpu.matmul %99, %104, %cst_44 {dimension_numbers = #tpu.dot_dimension_numbers<[1], [0], [0], [1], [0, 0, 1, 1], [], []>} : vector<1x32xf32>, vector<32x160xf32>, vector<1x160xf32> -> vector<1x160xf32>
    %106 = arith.addf %103, %105 : vector<1x160xf32>
    %c0_45 = arith.constant 0 : index
    %c0_46 = arith.constant 0 : index
    %107 = vector.load %arg6[%c0_45, %c0_46] : memref<32x160xf32, #tpu.memory_space<vmem>>, vector<32x160xf32>
    %cst_47 = arith.constant dense<0.000000e+00> : vector<1x160xf32>
    %108 = tpu.matmul %101, %107, %cst_47 {dimension_numbers = #tpu.dot_dimension_numbers<[1], [0], [0], [1], [0, 0, 1, 1], [], []>} : vector<1x32xf32>, vector<32x160xf32>, vector<1x160xf32> -> vector<1x160xf32>
    %109 = arith.addf %106, %108 : vector<1x160xf32>
    %110 = arith.negf %109 : vector<1x160xf32>
    %111 = math.exp %110 : vector<1x160xf32>
    %cst_48 = arith.constant 1.000000e+00 : f32
    %112 = vector.broadcast %cst_48 : f32 to vector<1x160xf32>
    %113 = arith.addf %112, %111 : vector<1x160xf32>
    %114 = arith.divf %112, %113 : vector<1x160xf32>
    %115 = vector.extract_strided_slice %114 {offsets = [0, 0], sizes = [1, 32], strides = [1, 1]} : vector<1x160xf32> to vector<1x32xf32>
    %116 = vector.extract_strided_slice %114 {offsets = [0, 32], sizes = [1, 32], strides = [1, 1]} : vector<1x160xf32> to vector<1x32xf32>
    %117 = vector.extract_strided_slice %114 {offsets = [0, 64], sizes = [1, 32], strides = [1, 1]} : vector<1x160xf32> to vector<1x32xf32>
    %118 = math.tanh %117 : vector<1x32xf32>
    %119 = vector.extract_strided_slice %114 {offsets = [0, 96], sizes = [1, 32], strides = [1, 1]} : vector<1x160xf32> to vector<1x32xf32>
    %120 = vector.extract_strided_slice %114 {offsets = [0, 128], sizes = [1, 32], strides = [1, 1]} : vector<1x160xf32> to vector<1x32xf32>
    %121 = arith.mulf %115, %118 : vector<1x32xf32>
    %122 = arith.index_cast %95 : i32 to index
    %c0_49 = arith.constant 0 : index
    %123 = vector.load %arg11[%122, %c0_49] : memref<8x32xf32, #tpu.memory_space<vmem>>, vector<1x32xf32>
    %124 = arith.mulf %119, %123 : vector<1x32xf32>
    %125 = arith.addf %121, %124 : vector<1x32xf32>
    %126 = arith.index_cast %97 : i32 to index
    %c0_50 = arith.constant 0 : index
    %127 = vector.load %arg11[%126, %c0_50] : memref<8x32xf32, #tpu.memory_space<vmem>>, vector<1x32xf32>
    %128 = arith.mulf %120, %127 : vector<1x32xf32>
    %129 = arith.addf %125, %128 : vector<1x32xf32>
    %130 = math.tanh %129 : vector<1x32xf32>
    %131 = arith.mulf %116, %130 : vector<1x32xf32>
    %132 = arith.index_cast %c2_i32 : i32 to index
    %c0_51 = arith.constant 0 : index
    %133 = vector.load %arg10[%132, %c0_51] : memref<8x32xf32, #tpu.memory_space<vmem>>, vector<1x32xf32>
    tpu.vector_store %arg10[%132, %c0_51], %131 {strides = array<i32>} : memref<8x32xf32, #tpu.memory_space<vmem>>, vector<1x32xf32>,
    %134 = arith.index_cast %c2_i32 : i32 to index
    %c0_52 = arith.constant 0 : index
    %135 = vector.load %arg11[%134, %c0_52] : memref<8x32xf32, #tpu.memory_space<vmem>>, vector<1x32xf32>
    tpu.vector_store %arg11[%134, %c0_52], %129 {strides = array<i32>} : memref<8x32xf32, #tpu.memory_space<vmem>>, vector<1x32xf32>,
    %c3_i32 = arith.constant 3 : i32
    %136 = arith.index_cast %c3_i32 : i32 to index
    %137 = memref.load %arg1[%136] : memref<7xi32, #tpu.memory_space<smem>>
    %138 = arith.index_cast %c3_i32 : i32 to index
    %139 = memref.load %arg2[%138] : memref<7xi32, #tpu.memory_space<smem>>
    %140 = arith.index_cast %137 : i32 to index
    %c0_53 = arith.constant 0 : index
    %141 = vector.load %arg10[%140, %c0_53] : memref<8x32xf32, #tpu.memory_space<vmem>>, vector<1x32xf32>
    %142 = arith.index_cast %139 : i32 to index
    %c0_54 = arith.constant 0 : index
    %143 = vector.load %arg10[%142, %c0_54] : memref<8x32xf32, #tpu.memory_space<vmem>>, vector<1x32xf32>
    %144 = arith.index_cast %c3_i32 : i32 to index
    %c0_55 = arith.constant 0 : index
    %145 = vector.load %arg12[%144, %c0_55] : memref<7x160xf32, #tpu.memory_space<vmem>>, vector<1x160xf32>
    %c0_56 = arith.constant 0 : index
    %c0_57 = arith.constant 0 : index
    %146 = vector.load %arg5[%c0_56, %c0_57] : memref<32x160xf32, #tpu.memory_space<vmem>>, vector<32x160xf32>
    %cst_58 = arith.constant dense<0.000000e+00> : vector<1x160xf32>
    %147 = tpu.matmul %141, %146, %cst_58 {dimension_numbers = #tpu.dot_dimension_numbers<[1], [0], [0], [1], [0, 0, 1, 1], [], []>} : vector<1x32xf32>, vector<32x160xf32>, vector<1x160xf32> -> vector<1x160xf32>
    %148 = arith.addf %145, %147 : vector<1x160xf32>
    %c0_59 = arith.constant 0 : index
    %c0_60 = arith.constant 0 : index
    %149 = vector.load %arg6[%c0_59, %c0_60] : memref<32x160xf32, #tpu.memory_space<vmem>>, vector<32x160xf32>
    %cst_61 = arith.constant dense<0.000000e+00> : vector<1x160xf32>
    %150 = tpu.matmul %143, %149, %cst_61 {dimension_numbers = #tpu.dot_dimension_numbers<[1], [0], [0], [1], [0, 0, 1, 1], [], []>} : vector<1x32xf32>, vector<32x160xf32>, vector<1x160xf32> -> vector<1x160xf32>
    %151 = arith.addf %148, %150 : vector<1x160xf32>
    %152 = arith.negf %151 : vector<1x160xf32>
    %153 = math.exp %152 : vector<1x160xf32>
    %cst_62 = arith.constant 1.000000e+00 : f32
    %154 = vector.broadcast %cst_62 : f32 to vector<1x160xf32>
    %155 = arith.addf %154, %153 : vector<1x160xf32>
    %156 = arith.divf %154, %155 : vector<1x160xf32>
    %157 = vector.extract_strided_slice %156 {offsets = [0, 0], sizes = [1, 32], strides = [1, 1]} : vector<1x160xf32> to vector<1x32xf32>
    %158 = vector.extract_strided_slice %156 {offsets = [0, 32], sizes = [1, 32], strides = [1, 1]} : vector<1x160xf32> to vector<1x32xf32>
    %159 = vector.extract_strided_slice %156 {offsets = [0, 64], sizes = [1, 32], strides = [1, 1]} : vector<1x160xf32> to vector<1x32xf32>
    %160 = math.tanh %159 : vector<1x32xf32>
    %161 = vector.extract_strided_slice %156 {offsets = [0, 96], sizes = [1, 32], strides = [1, 1]} : vector<1x160xf32> to vector<1x32xf32>
    %162 = vector.extract_strided_slice %156 {offsets = [0, 128], sizes = [1, 32], strides = [1, 1]} : vector<1x160xf32> to vector<1x32xf32>
    %163 = arith.mulf %157, %160 : vector<1x32xf32>
    %164 = arith.index_cast %137 : i32 to index
    %c0_63 = arith.constant 0 : index
    %165 = vector.load %arg11[%164, %c0_63] : memref<8x32xf32, #tpu.memory_space<vmem>>, vector<1x32xf32>
    %166 = arith.mulf %161, %165 : vector<1x32xf32>
    %167 = arith.addf %163, %166 : vector<1x32xf32>
    %168 = arith.index_cast %139 : i32 to index
    %c0_64 = arith.constant 0 : index
    %169 = vector.load %arg11[%168, %c0_64] : memref<8x32xf32, #tpu.memory_space<vmem>>, vector<1x32xf32>
    %170 = arith.mulf %162, %169 : vector<1x32xf32>
    %171 = arith.addf %167, %170 : vector<1x32xf32>
    %172 = math.tanh %171 : vector<1x32xf32>
    %173 = arith.mulf %158, %172 : vector<1x32xf32>
    %174 = arith.index_cast %c3_i32 : i32 to index
    %c0_65 = arith.constant 0 : index
    %175 = vector.load %arg10[%174, %c0_65] : memref<8x32xf32, #tpu.memory_space<vmem>>, vector<1x32xf32>
    tpu.vector_store %arg10[%174, %c0_65], %173 {strides = array<i32>} : memref<8x32xf32, #tpu.memory_space<vmem>>, vector<1x32xf32>,
    %176 = arith.index_cast %c3_i32 : i32 to index
    %c0_66 = arith.constant 0 : index
    %177 = vector.load %arg11[%176, %c0_66] : memref<8x32xf32, #tpu.memory_space<vmem>>, vector<1x32xf32>
    tpu.vector_store %arg11[%176, %c0_66], %171 {strides = array<i32>} : memref<8x32xf32, #tpu.memory_space<vmem>>, vector<1x32xf32>,
    %c4_i32 = arith.constant 4 : i32
    %178 = arith.index_cast %c4_i32 : i32 to index
    %179 = memref.load %arg1[%178] : memref<7xi32, #tpu.memory_space<smem>>
    %180 = arith.index_cast %c4_i32 : i32 to index
    %181 = memref.load %arg2[%180] : memref<7xi32, #tpu.memory_space<smem>>
    %182 = arith.index_cast %179 : i32 to index
    %c0_67 = arith.constant 0 : index
    %183 = vector.load %arg10[%182, %c0_67] : memref<8x32xf32, #tpu.memory_space<vmem>>, vector<1x32xf32>
    %184 = arith.index_cast %181 : i32 to index
    %c0_68 = arith.constant 0 : index
    %185 = vector.load %arg10[%184, %c0_68] : memref<8x32xf32, #tpu.memory_space<vmem>>, vector<1x32xf32>
    %186 = arith.index_cast %c4_i32 : i32 to index
    %c0_69 = arith.constant 0 : index
    %187 = vector.load %arg12[%186, %c0_69] : memref<7x160xf32, #tpu.memory_space<vmem>>, vector<1x160xf32>
    %c0_70 = arith.constant 0 : index
    %c0_71 = arith.constant 0 : index
    %188 = vector.load %arg5[%c0_70, %c0_71] : memref<32x160xf32, #tpu.memory_space<vmem>>, vector<32x160xf32>
    %cst_72 = arith.constant dense<0.000000e+00> : vector<1x160xf32>
    %189 = tpu.matmul %183, %188, %cst_72 {dimension_numbers = #tpu.dot_dimension_numbers<[1], [0], [0], [1], [0, 0, 1, 1], [], []>} : vector<1x32xf32>, vector<32x160xf32>, vector<1x160xf32> -> vector<1x160xf32>
    %190 = arith.addf %187, %189 : vector<1x160xf32>
    %c0_73 = arith.constant 0 : index
    %c0_74 = arith.constant 0 : index
    %191 = vector.load %arg6[%c0_73, %c0_74] : memref<32x160xf32, #tpu.memory_space<vmem>>, vector<32x160xf32>
    %cst_75 = arith.constant dense<0.000000e+00> : vector<1x160xf32>
    %192 = tpu.matmul %185, %191, %cst_75 {dimension_numbers = #tpu.dot_dimension_numbers<[1], [0], [0], [1], [0, 0, 1, 1], [], []>} : vector<1x32xf32>, vector<32x160xf32>, vector<1x160xf32> -> vector<1x160xf32>
    %193 = arith.addf %190, %192 : vector<1x160xf32>
    %194 = arith.negf %193 : vector<1x160xf32>
    %195 = math.exp %194 : vector<1x160xf32>
    %cst_76 = arith.constant 1.000000e+00 : f32
    %196 = vector.broadcast %cst_76 : f32 to vector<1x160xf32>
    %197 = arith.addf %196, %195 : vector<1x160xf32>
    %198 = arith.divf %196, %197 : vector<1x160xf32>
    %199 = vector.extract_strided_slice %198 {offsets = [0, 0], sizes = [1, 32], strides = [1, 1]} : vector<1x160xf32> to vector<1x32xf32>
    %200 = vector.extract_strided_slice %198 {offsets = [0, 32], sizes = [1, 32], strides = [1, 1]} : vector<1x160xf32> to vector<1x32xf32>
    %201 = vector.extract_strided_slice %198 {offsets = [0, 64], sizes = [1, 32], strides = [1, 1]} : vector<1x160xf32> to vector<1x32xf32>
    %202 = math.tanh %201 : vector<1x32xf32>
    %203 = vector.extract_strided_slice %198 {offsets = [0, 96], sizes = [1, 32], strides = [1, 1]} : vector<1x160xf32> to vector<1x32xf32>
    %204 = vector.extract_strided_slice %198 {offsets = [0, 128], sizes = [1, 32], strides = [1, 1]} : vector<1x160xf32> to vector<1x32xf32>
    %205 = arith.mulf %199, %202 : vector<1x32xf32>
    %206 = arith.index_cast %179 : i32 to index
    %c0_77 = arith.constant 0 : index
    %207 = vector.load %arg11[%206, %c0_77] : memref<8x32xf32, #tpu.memory_space<vmem>>, vector<1x32xf32>
    %208 = arith.mulf %203, %207 : vector<1x32xf32>
    %209 = arith.addf %205, %208 : vector<1x32xf32>
    %210 = arith.index_cast %181 : i32 to index
    %c0_78 = arith.constant 0 : index
    %211 = vector.load %arg11[%210, %c0_78] : memref<8x32xf32, #tpu.memory_space<vmem>>, vector<1x32xf32>
    %212 = arith.mulf %204, %211 : vector<1x32xf32>
    %213 = arith.addf %209, %212 : vector<1x32xf32>
    %214 = math.tanh %213 : vector<1x32xf32>
    %215 = arith.mulf %200, %214 : vector<1x32xf32>
    %216 = arith.index_cast %c4_i32 : i32 to index
    %c0_79 = arith.constant 0 : index
    %217 = vector.load %arg10[%216, %c0_79] : memref<8x32xf32, #tpu.memory_space<vmem>>, vector<1x32xf32>
    tpu.vector_store %arg10[%216, %c0_79], %215 {strides = array<i32>} : memref<8x32xf32, #tpu.memory_space<vmem>>, vector<1x32xf32>,
    %218 = arith.index_cast %c4_i32 : i32 to index
    %c0_80 = arith.constant 0 : index
    %219 = vector.load %arg11[%218, %c0_80] : memref<8x32xf32, #tpu.memory_space<vmem>>, vector<1x32xf32>
    tpu.vector_store %arg11[%218, %c0_80], %213 {strides = array<i32>} : memref<8x32xf32, #tpu.memory_space<vmem>>, vector<1x32xf32>,
    %c5_i32 = arith.constant 5 : i32
    %220 = arith.index_cast %c5_i32 : i32 to index
    %221 = memref.load %arg1[%220] : memref<7xi32, #tpu.memory_space<smem>>
    %222 = arith.index_cast %c5_i32 : i32 to index
    %223 = memref.load %arg2[%222] : memref<7xi32, #tpu.memory_space<smem>>
    %224 = arith.index_cast %221 : i32 to index
    %c0_81 = arith.constant 0 : index
    %225 = vector.load %arg10[%224, %c0_81] : memref<8x32xf32, #tpu.memory_space<vmem>>, vector<1x32xf32>
    %226 = arith.index_cast %223 : i32 to index
    %c0_82 = arith.constant 0 : index
    %227 = vector.load %arg10[%226, %c0_82] : memref<8x32xf32, #tpu.memory_space<vmem>>, vector<1x32xf32>
    %228 = arith.index_cast %c5_i32 : i32 to index
    %c0_83 = arith.constant 0 : index
    %229 = vector.load %arg12[%228, %c0_83] : memref<7x160xf32, #tpu.memory_space<vmem>>, vector<1x160xf32>
    %c0_84 = arith.constant 0 : index
    %c0_85 = arith.constant 0 : index
    %230 = vector.load %arg5[%c0_84, %c0_85] : memref<32x160xf32, #tpu.memory_space<vmem>>, vector<32x160xf32>
    %cst_86 = arith.constant dense<0.000000e+00> : vector<1x160xf32>
    %231 = tpu.matmul %225, %230, %cst_86 {dimension_numbers = #tpu.dot_dimension_numbers<[1], [0], [0], [1], [0, 0, 1, 1], [], []>} : vector<1x32xf32>, vector<32x160xf32>, vector<1x160xf32> -> vector<1x160xf32>
    %232 = arith.addf %229, %231 : vector<1x160xf32>
    %c0_87 = arith.constant 0 : index
    %c0_88 = arith.constant 0 : index
    %233 = vector.load %arg6[%c0_87, %c0_88] : memref<32x160xf32, #tpu.memory_space<vmem>>, vector<32x160xf32>
    %cst_89 = arith.constant dense<0.000000e+00> : vector<1x160xf32>
    %234 = tpu.matmul %227, %233, %cst_89 {dimension_numbers = #tpu.dot_dimension_numbers<[1], [0], [0], [1], [0, 0, 1, 1], [], []>} : vector<1x32xf32>, vector<32x160xf32>, vector<1x160xf32> -> vector<1x160xf32>
    %235 = arith.addf %232, %234 : vector<1x160xf32>
    %236 = arith.negf %235 : vector<1x160xf32>
    %237 = math.exp %236 : vector<1x160xf32>
    %cst_90 = arith.constant 1.000000e+00 : f32
    %238 = vector.broadcast %cst_90 : f32 to vector<1x160xf32>
    %239 = arith.addf %238, %237 : vector<1x160xf32>
    %240 = arith.divf %238, %239 : vector<1x160xf32>
    %241 = vector.extract_strided_slice %240 {offsets = [0, 0], sizes = [1, 32], strides = [1, 1]} : vector<1x160xf32> to vector<1x32xf32>
    %242 = vector.extract_strided_slice %240 {offsets = [0, 32], sizes = [1, 32], strides = [1, 1]} : vector<1x160xf32> to vector<1x32xf32>
    %243 = vector.extract_strided_slice %240 {offsets = [0, 64], sizes = [1, 32], strides = [1, 1]} : vector<1x160xf32> to vector<1x32xf32>
    %244 = math.tanh %243 : vector<1x32xf32>
    %245 = vector.extract_strided_slice %240 {offsets = [0, 96], sizes = [1, 32], strides = [1, 1]} : vector<1x160xf32> to vector<1x32xf32>
    %246 = vector.extract_strided_slice %240 {offsets = [0, 128], sizes = [1, 32], strides = [1, 1]} : vector<1x160xf32> to vector<1x32xf32>
    %247 = arith.mulf %241, %244 : vector<1x32xf32>
    %248 = arith.index_cast %221 : i32 to index
    %c0_91 = arith.constant 0 : index
    %249 = vector.load %arg11[%248, %c0_91] : memref<8x32xf32, #tpu.memory_space<vmem>>, vector<1x32xf32>
    %250 = arith.mulf %245, %249 : vector<1x32xf32>
    %251 = arith.addf %247, %250 : vector<1x32xf32>
    %252 = arith.index_cast %223 : i32 to index
    %c0_92 = arith.constant 0 : index
    %253 = vector.load %arg11[%252, %c0_92] : memref<8x32xf32, #tpu.memory_space<vmem>>, vector<1x32xf32>
    %254 = arith.mulf %246, %253 : vector<1x32xf32>
    %255 = arith.addf %251, %254 : vector<1x32xf32>
    %256 = math.tanh %255 : vector<1x32xf32>
    %257 = arith.mulf %242, %256 : vector<1x32xf32>
    %258 = arith.index_cast %c5_i32 : i32 to index
    %c0_93 = arith.constant 0 : index
    %259 = vector.load %arg10[%258, %c0_93] : memref<8x32xf32, #tpu.memory_space<vmem>>, vector<1x32xf32>
    tpu.vector_store %arg10[%258, %c0_93], %257 {strides = array<i32>} : memref<8x32xf32, #tpu.memory_space<vmem>>, vector<1x32xf32>,
    %260 = arith.index_cast %c5_i32 : i32 to index
    %c0_94 = arith.constant 0 : index
    %261 = vector.load %arg11[%260, %c0_94] : memref<8x32xf32, #tpu.memory_space<vmem>>, vector<1x32xf32>
    tpu.vector_store %arg11[%260, %c0_94], %255 {strides = array<i32>} : memref<8x32xf32, #tpu.memory_space<vmem>>, vector<1x32xf32>,
    %c6_i32 = arith.constant 6 : i32
    %262 = arith.index_cast %c6_i32 : i32 to index
    %263 = memref.load %arg1[%262] : memref<7xi32, #tpu.memory_space<smem>>
    %264 = arith.index_cast %c6_i32 : i32 to index
    %265 = memref.load %arg2[%264] : memref<7xi32, #tpu.memory_space<smem>>
    %266 = arith.index_cast %263 : i32 to index
    %c0_95 = arith.constant 0 : index
    %267 = vector.load %arg10[%266, %c0_95] : memref<8x32xf32, #tpu.memory_space<vmem>>, vector<1x32xf32>
    %268 = arith.index_cast %265 : i32 to index
    %c0_96 = arith.constant 0 : index
    %269 = vector.load %arg10[%268, %c0_96] : memref<8x32xf32, #tpu.memory_space<vmem>>, vector<1x32xf32>
    %270 = arith.index_cast %c6_i32 : i32 to index
    %c0_97 = arith.constant 0 : index
    %271 = vector.load %arg12[%270, %c0_97] : memref<7x160xf32, #tpu.memory_space<vmem>>, vector<1x160xf32>
    %c0_98 = arith.constant 0 : index
    %c0_99 = arith.constant 0 : index
    %272 = vector.load %arg5[%c0_98, %c0_99] : memref<32x160xf32, #tpu.memory_space<vmem>>, vector<32x160xf32>
    %cst_100 = arith.constant dense<0.000000e+00> : vector<1x160xf32>
    %273 = tpu.matmul %267, %272, %cst_100 {dimension_numbers = #tpu.dot_dimension_numbers<[1], [0], [0], [1], [0, 0, 1, 1], [], []>} : vector<1x32xf32>, vector<32x160xf32>, vector<1x160xf32> -> vector<1x160xf32>
    %274 = arith.addf %271, %273 : vector<1x160xf32>
    %c0_101 = arith.constant 0 : index
    %c0_102 = arith.constant 0 : index
    %275 = vector.load %arg6[%c0_101, %c0_102] : memref<32x160xf32, #tpu.memory_space<vmem>>, vector<32x160xf32>
    %cst_103 = arith.constant dense<0.000000e+00> : vector<1x160xf32>
    %276 = tpu.matmul %269, %275, %cst_103 {dimension_numbers = #tpu.dot_dimension_numbers<[1], [0], [0], [1], [0, 0, 1, 1], [], []>} : vector<1x32xf32>, vector<32x160xf32>, vector<1x160xf32> -> vector<1x160xf32>
    %277 = arith.addf %274, %276 : vector<1x160xf32>
    %278 = arith.negf %277 : vector<1x160xf32>
    %279 = math.exp %278 : vector<1x160xf32>
    %cst_104 = arith.constant 1.000000e+00 : f32
    %280 = vector.broadcast %cst_104 : f32 to vector<1x160xf32>
    %281 = arith.addf %280, %279 : vector<1x160xf32>
    %282 = arith.divf %280, %281 : vector<1x160xf32>
    %283 = vector.extract_strided_slice %282 {offsets = [0, 0], sizes = [1, 32], strides = [1, 1]} : vector<1x160xf32> to vector<1x32xf32>
    %284 = vector.extract_strided_slice %282 {offsets = [0, 32], sizes = [1, 32], strides = [1, 1]} : vector<1x160xf32> to vector<1x32xf32>
    %285 = vector.extract_strided_slice %282 {offsets = [0, 64], sizes = [1, 32], strides = [1, 1]} : vector<1x160xf32> to vector<1x32xf32>
    %286 = math.tanh %285 : vector<1x32xf32>
    %287 = vector.extract_strided_slice %282 {offsets = [0, 96], sizes = [1, 32], strides = [1, 1]} : vector<1x160xf32> to vector<1x32xf32>
    %288 = vector.extract_strided_slice %282 {offsets = [0, 128], sizes = [1, 32], strides = [1, 1]} : vector<1x160xf32> to vector<1x32xf32>
    %289 = arith.mulf %283, %286 : vector<1x32xf32>
    %290 = arith.index_cast %263 : i32 to index
    %c0_105 = arith.constant 0 : index
    %291 = vector.load %arg11[%290, %c0_105] : memref<8x32xf32, #tpu.memory_space<vmem>>, vector<1x32xf32>
    %292 = arith.mulf %287, %291 : vector<1x32xf32>
    %293 = arith.addf %289, %292 : vector<1x32xf32>
    %294 = arith.index_cast %265 : i32 to index
    %c0_106 = arith.constant 0 : index
    %295 = vector.load %arg11[%294, %c0_106] : memref<8x32xf32, #tpu.memory_space<vmem>>, vector<1x32xf32>
    %296 = arith.mulf %288, %295 : vector<1x32xf32>
    %297 = arith.addf %293, %296 : vector<1x32xf32>
    %298 = math.tanh %297 : vector<1x32xf32>
    %299 = arith.mulf %284, %298 : vector<1x32xf32>
    %300 = arith.index_cast %c6_i32 : i32 to index
    %c0_107 = arith.constant 0 : index
    %301 = vector.load %arg10[%300, %c0_107] : memref<8x32xf32, #tpu.memory_space<vmem>>, vector<1x32xf32>
    tpu.vector_store %arg10[%300, %c0_107], %299 {strides = array<i32>} : memref<8x32xf32, #tpu.memory_space<vmem>>, vector<1x32xf32>,
    %302 = arith.index_cast %c6_i32 : i32 to index
    %c0_108 = arith.constant 0 : index
    %303 = vector.load %arg11[%302, %c0_108] : memref<8x32xf32, #tpu.memory_space<vmem>>, vector<1x32xf32>
    tpu.vector_store %arg11[%302, %c0_108], %297 {strides = array<i32>} : memref<8x32xf32, #tpu.memory_space<vmem>>, vector<1x32xf32>,
    %c7_i32 = arith.constant 7 : i32
    %c6 = arith.constant 6 : index
    %c0_109 = arith.constant 0 : index
    %304 = vector.load %arg10[%c6, %c0_109] : memref<8x32xf32, #tpu.memory_space<vmem>>, vector<1x32xf32>
    %c0_110 = arith.constant 0 : index
    %c0_111 = arith.constant 0 : index
    %305 = vector.load %arg8[%c0_110, %c0_111] : memref<1x32xf32, #tpu.memory_space<vmem>>, vector<1x32xf32>
    tpu.vector_store %arg8[%c0_110, %c0_111], %304 {strides = array<i32>} : memref<1x32xf32, #tpu.memory_space<vmem>>, vector<1x32xf32>,
    %c6_112 = arith.constant 6 : index
    %c0_113 = arith.constant 0 : index
    %306 = vector.load %arg11[%c6_112, %c0_113] : memref<8x32xf32, #tpu.memory_space<vmem>>, vector<1x32xf32>
    %c0_114 = arith.constant 0 : index
    %c0_115 = arith.constant 0 : index
    %307 = vector.load %arg9[%c0_114, %c0_115] : memref<1x32xf32, #tpu.memory_space<vmem>>, vector<1x32xf32>
    tpu.vector_store %arg9[%c0_114, %c0_115], %306 {strides = array<i32>} : memref<1x32xf32, #tpu.memory_space<vmem>>, vector<1x32xf32>,
    return
  }
  func.func @transform_0(%arg0: i32, %arg1: memref<7xi32, #tpu.memory_space<smem>>, %arg2: memref<7xi32, #tpu.memory_space<smem>>) -> (i32, i32) {
    %c0_i32 = arith.constant 0 : i32
    %c0_i32_0 = arith.constant 0 : i32
    %c0_i32_1 = arith.constant 0 : i32
    return %c0_i32, %c0_i32_0 : i32, i32
  }
  func.func @transform_1(%arg0: i32, %arg1: memref<7xi32, #tpu.memory_space<smem>>, %arg2: memref<7xi32, #tpu.memory_space<smem>>) -> (i32, i32) {
    %c0_i32 = arith.constant 0 : i32
    %c0_i32_0 = arith.constant 0 : i32
    %c0_i32_1 = arith.constant 0 : i32
    return %c0_i32, %c0_i32_0 : i32, i32
  }
  func.func @transform_2(%arg0: i32, %arg1: memref<7xi32, #tpu.memory_space<smem>>, %arg2: memref<7xi32, #tpu.memory_space<smem>>) -> (i32, i32) {
    %c0_i32 = arith.constant 0 : i32
    %c0_i32_0 = arith.constant 0 : i32
    %c0_i32_1 = arith.constant 0 : i32
    return %c0_i32, %c0_i32_0 : i32, i32
  }
  func.func @transform_3(%arg0: i32, %arg1: memref<7xi32, #tpu.memory_space<smem>>, %arg2: memref<7xi32, #tpu.memory_space<smem>>) -> (i32, i32) {
    %c0_i32 = arith.constant 0 : i32
    %c0_i32_0 = arith.constant 0 : i32
    %c0_i32_1 = arith.constant 0 : i32
    return %c0_i32, %c0_i32_0 : i32, i32
  }
  func.func @transform_4(%arg0: i32, %arg1: memref<7xi32, #tpu.memory_space<smem>>, %arg2: memref<7xi32, #tpu.memory_space<smem>>) -> (i32, i32) {
    %c0_i32 = arith.constant 0 : i32
    %c0_i32_0 = arith.constant 0 : i32
    %c0_i32_1 = arith.constant 0 : i32
    return %c0_i32, %c0_i32_0 : i32, i32
  }
  func.func @transform_5(%arg0: i32, %arg1: memref<7xi32, #tpu.memory_space<smem>>, %arg2: memref<7xi32, #tpu.memory_space<smem>>) -> (i32, i32) {
    %c0_i32 = arith.constant 0 : i32
    %c0_i32_0 = arith.constant 0 : i32
    %c0_i32_1 = arith.constant 0 : i32
    return %c0_i32, %c0_i32_0 : i32, i32
  }
  func.func @transform_6(%arg0: i32, %arg1: memref<7xi32, #tpu.memory_space<smem>>, %arg2: memref<7xi32, #tpu.memory_space<smem>>) -> (i32, i32) {
    %c0_i32 = arith.constant 0 : i32
    %c0_i32_0 = arith.constant 0 : i32
    %c0_i32_1 = arith.constant 0 : i32
    return %c0_i32, %c0_i32_0 : i32, i32
  }
}

</mosaic_0001>

<bundles_post_ra>
// kernel: tpu_custom_call.1
= control target key start
LH: loop header
LB: loop body
LE: loop exit
PB: predicated region body
PF: predicated region fallthrough
CT: control target
= control target key end

     0   :  { %s1784_s11 = smov [#allocation6]   ;;  %s1785_s12 = smov [#allocation7]   ;;  %s2129_s0 = inlined_call_operand.hbm [shape: s32[7], index: 0, kind: input, shape index: {}]   ;;  %s2130_s2 = inlined_call_operand.hbm [shape: f32[7,32], index: 2, kind: input, shape index: {}]   ;;  %s2131_s3 = inlined_call_operand.hbm [shape: f32[32,160], index: 3, kind: input, shape index: {}]   ;;  %s2132_s4 = inlined_call_operand.hbm [shape: f32[32,160], index: 4, kind: input, shape index: {}]   ;;  %s2133_s5 = inlined_call_operand.hbm [shape: f32[32,160], index: 5, kind: input, shape index: {}]   ;;  %s2134_s6 = inlined_call_operand.vmem [shape: f32[1,160], index: 6, kind: input, shape index: {}]   ;;  %s2135_s7 = inlined_call_operand.hbm [shape: f32[1,32], index: 7, kind: output, shape index: {0}]   ;;  %s2136_s8 = inlined_call_operand.hbm [shape: f32[1,32], index: 8, kind: output, shape index: {1}]   ;;  %s2137_s1 = inlined_call_operand.hbm [shape: s32[7], index: 1, kind: input, shape index: {}]  }
   0x1   :  { %s15_s29 = sshll.u32 %s2129_s0, 4  ;;  %s20_s10 = sshll.u32 %s2137_s1, 4  ;;  %s16_s29 = int_to_ptr.hbm [resolvable:$true] %s15_s29  ;;  %s21_s10 = int_to_ptr.hbm [resolvable:$true] %s20_s10 }
   0x2   :  { %18 = dma.hbm_to_smem %s16_s29, 16, %s1784_s11, [#allocation5] }
   0x3   :  { %23 = dma.hbm_to_smem %s21_s10, 16, %s1785_s12, [#allocation5] }
   0x4   :  { %1772 = dma.done.wait [#allocation5], 32 }
   0x5   :  { %1773 = vsyncadd [#allocation5], 4294967264 }
   0x6   :  { %26 = sfence }
   0x7   :  { %27 = vsyncpa [#allocation9], 0 }
   0x8   :  { %28 = vsyncpa [#allocation12], 0 }
   0x9   :  { %29 = vsyncpa [#allocation15], 0 }
   0xa   :  { %30 = vsyncpa [#allocation10], 0  ;;  %s47_s0 = sshll.u32 %s2131_s3, 4  ;;  %s48_s0 = int_to_ptr.hbm [resolvable:$true] %s47_s0 }
   0xb   :  { %31 = vsyncpa [#allocation18], 0  ;;  %s1786_s1 = smov [#allocation11]   ;;  %s37_s18 = sshll.u32 %s2130_s2, 4  ;;  %s38_s18 = int_to_ptr.hbm [resolvable:$true] %s37_s18 }
   0xc   :  { %s49_s15 = sshll.u32 %s1786_s1, 4  ;;  %s1787_s19 = smov 256   ;;  %s50_s15 = int_to_ptr.vmem [resolvable:$true] %s49_s15 }
   0xd   :  { %s1788_s20 = smov 16   ;;  %s1789_s21 = smov [#allocation8]  }
   0xe   :  { %55 = dma.hbm_to_vmem [thread:$0]  %s48_s0, 1024, %s50_s15, [#allocation12], %s1787_s19, %s1787_s19, %s1788_s20  }
   0xf   :  { %s39_s22 = sshll.u32 %s1789_s21, 4  ;;  %s60_s25 = sshll.u32 %s2132_s4, 4  ;;  %s40_s22 = int_to_ptr.vmem [resolvable:$true] %s39_s22  ;;  %s61_s25 = int_to_ptr.hbm [resolvable:$true] %s60_s25 }
  0x10   :  { %42 = dma.hbm_to_vmem [thread:$0]  %s38_s18, 128, %s40_s22, [#allocation9]  }
  0x11   :  { %s73_s27 = sshll.u32 %s2133_s5, 4  ;;  %s1790_s28 = smov [#allocation13]   ;;  %s74_s27 = int_to_ptr.hbm [resolvable:$true] %s73_s27 }
  0x12   :  { %s62_s29 = sshll.u32 %s1790_s28, 4  ;;  %s1791_s2 = smov [#allocation14]   ;;  %s63_s29 = int_to_ptr.vmem [resolvable:$true] %s62_s29 }
  0x13   :  { %68 = dma.hbm_to_vmem [thread:$0]  %s61_s25, 1024, %s63_s29, [#allocation12], %s1787_s19, %s1787_s19, %s1788_s20  }
  0x14   :  { %s75_s30 = sshll.u32 %s1791_s2, 4  ;;  %s76_s30 = int_to_ptr.vmem [resolvable:$true] %s75_s30 }
  0x15   :  { %81 = dma.hbm_to_vmem [thread:$0]  %s74_s27, 1024, %s76_s30, [#allocation15], %s1787_s19, %s1787_s19, %s1788_s20  }
  0x16   :  { %1774 = dma.done.wait [#allocation9], 128  }
  0x17   :  { %1775 = vsyncadd [#allocation9], 4294967168 }
  0x18   :  { %1776 = dma.done.wait [#allocation12], 2048  }
  0x19   :  { %1777 = vsyncadd [#allocation12], 4294965248 }
  0x1a   :  { %1778 = dma.done.wait [#allocation15], 1024  }
  0x1b   :  { %1779 = vsyncadd [#allocation15], 4294966272  ;;  %vm162_vm0 = vcmask 253952   ;;  %v1792_v0 = vmov 0.0   ;;  %s1863_s4 = sld [smem:[#allocation6]]  ;;  %v107_v1 = vld [vmem:[#allocation11 + $0x30] sm:$0xff] }
  0x1c   :  { %163 = vst.msk [vmem:[#allocation2 + $0x7] sm:$0x1] %vm162_vm0, %v1792_v0  ;;  %v108_v2 = vld [vmem:[#allocation11 + $0x38] sm:$0xff]  ;;  %131 = vmatpush.msra.mxu0 %v107_v1  ;;  %v105_v4 = vld [vmem:[#allocation11 + $0x20] sm:$0xff]  ;;  %v106_v5 = vld [vmem:[#allocation11 + $0x28] sm:$0xff]  ;;  %s1877_s5 = sld [smem:[#allocation7]] }
  0x1d   :  { %164 = vst.msk [vmem:[#allocation3 + $0x7] sm:$0x1] %vm162_vm0, %v1792_v0  ;;  %v1865_v3 = vld [vmem:[#allocation13 + $0x38] sm:$0xff]  ;;  %151 = vmatpush.msra.mxu1 %v108_v2  ;;  %v1867_v6 = vld [vmem:[#allocation13 + $0x30] sm:$0xff]  ;;  %v1871_v7 = vld [vmem:[#allocation13 + $0x28] sm:$0xff]  ;;  %vm115_vm1 = vcmask 261120  }
  0x1e   :  { %215 = vmatpush.msra.mxu3 %v1865_v3  ;;  %195 = vmatpush.msra.mxu2 %v1867_v6  ;;  %v103_v8 = vld [vmem:[#allocation11 + $0x10] sm:$0xff]  ;;  %v104_v9 = vld [vmem:[#allocation11 + $0x18] sm:$0xff]  ;;  %v1873_v10 = vld [vmem:[#allocation13 + $0x20] sm:$0xff]  ;;  %s1793_s11 = smov 96   ;;  %vm160_vm2 = vcmask 260096   ;;  %vm226_vm3 = vcmask 1040384  }
  0x1f   :  { %132 = vmatpush.msra.mxu0 %v105_v4  ;;  %152 = vmatpush.msra.mxu1 %v106_v5  ;;  %v1875_v11 = vld [vmem:[#allocation13 + $0x18] sm:$0xff]  ;;  %v101_v12 = vld [vmem:[#allocation11] sm:$0xff]  ;;  %v102_v13 = vld [vmem:[#allocation11 + $0x8] sm:$0xff]  ;;  %s1795_s0 = smov 64   ;;  %s1492_s15 = sld [smem:[#allocation6 + $0x1]] }
  0x20   :  { %216 = vmatpush.msra.mxu3 %v1871_v7  ;;  %196 = vmatpush.msra.mxu2 %v1873_v10  ;;  %v1881_v14 = vld [vmem:[#allocation13 + $0x10] sm:$0xff]  ;;  %v100_v15 = vld [vmem:[#allocation8] sm:$0x7f]  ;;  %v1885_v16 = vld [vmem:[#allocation13 + $0x8] sm:$0xff]  ;;  %s1969_s17 = sld [smem:[#allocation7 + $0x1]] }
  0x21   :  { %133 = vmatpush.msra.mxu0 %v103_v8  ;;  %153 = vmatpush.msra.mxu1 %v104_v9  ;;  %v1887_v17 = vld [vmem:[#allocation14 + $0x38] sm:$0xff]  ;;  %s167_s9 = scalar_lea.vmem [#allocation2], %s1863_s4  ;;  %v1890_v19 = vld [vmem:[#allocation13] sm:$0xff]  ;;  %v1894_v20 = vld [vmem:[#allocation14 + $0x30] sm:$0xff]  ;;  %s312_s10 = scalar_lea.vmem [#allocation3], %s1863_s4 }
  0x22   :  { %217 = vmatpush.msra.mxu3 %v1875_v11  ;;  %197 = vmatpush.msra.mxu2 %v1881_v14  ;;  %v1898_v21 = vld [vmem:[#allocation14 + $0x28] sm:$0xff]  ;;  %v1903_v23 = vld [vmem:[#allocation14 + $0x20] sm:$0xff]  ;;  %v1907_v24 = vld [vmem:[#allocation14 + $0x18] sm:$0xff]  ;;  %s169_s12 = scalar_lea.vmem [#allocation2], %s1877_s5  ;;  %s324_s1 = scalar_lea.vmem [#allocation3], %s1877_s5 }
  0x23   :  { %134 = vmatpush.msra.mxu0 %v101_v12  ;;  %154 = vmatpush.msra.mxu1 %v102_v13  ;;  %v168_v18 = vld [vmem:[%s167_s9] sm:$0x1]  ;;  %v1914_v26 = vld [vmem:[#allocation14 + $0x8] sm:$0xff]  ;;  %v1918_v27 = vld [vmem:[#allocation14] sm:$0xff]  ;;  %s1499_s21 = sld [smem:[#allocation6 + $0x2]] }
  0x24   :  { %1485 = vmatmul.msk.f32.vlgmr.msra.gmra.mxu0 %vm115_vm1, %v100_v15  ;;  %1486 = vmatmul.msk.f32.vlgmr.msra.gmra.mxu1 %vm115_vm1, %v100_v15  ;;  %v313_v22 = vld [vmem:[%s312_s10] sm:$0x1]  ;;  %s2002_s23 = sld [smem:[#allocation7 + $0x2]] }
  0x25   :  { %218 = vmatpush.msra.mxu3 %v1885_v16  ;;  %273 = vmatpush.msrb.mxu1 %v1887_v17  ;;  %v1910_v25 = vld [vmem:[#allocation14 + $0x10] sm:$0xff]  ;;  %s491_s16 = scalar_lea.vmem [#allocation3], %s1492_s15  ;;  %s346_s18 = scalar_lea.vmem [#allocation2], %s1492_s15 }
  0x26   :  { %1488 = vmatmul.msk.f32.vlgmr.msra.gmra.mxu3 %vm115_vm1, %v168_v18  ;;  %198 = vmatpush.msra.mxu2 %v1890_v19  ;;  %v170_v28 = vld [vmem:[%s169_s12] sm:$0x1]  ;;  %s348_s19 = scalar_lea.vmem [#allocation2], %s1969_s17  ;;  %s503_s20 = scalar_lea.vmem [#allocation3], %s1969_s17 }
  0x27   :  { %1487 = vmatmul.msk.f32.vlgmr.msra.gmra.mxu2 %vm115_vm1, %v168_v18  ;;  %253 = vmatpush.msrb.mxu0 %v1894_v20  ;;  %v109_v29 = vld [vmem:[%s2134_s6] sm:$0x3]  ;;  %s1794_s6 = smov 32   ;;  %s1506_s26 = sld [smem:[#allocation6 + $0x3]] }
  0x28   :  { %274 = vmatpush.msrb.mxu1 %v1898_v21  ;;  %315 = vrot.lane.b32.xlu0 %v313_v22, %s1793_s11  ;;  %v111_v30 = vperm.slane %v109_v29, 0  ;;  %v112_v31 = vperm.slane %v109_v29, 1  ;;  %v325_v0 = vld [vmem:[%s324_s1] sm:$0x1]  ;;  %s2035_s28 = sld [smem:[#allocation7 + $0x3]] }
  0x29   :  { %254 = vmatpush.msrb.mxu0 %v1903_v23  ;;  %395 = vmatpush.msrb.mxu3 %v1865_v3  ;;  %s670_s22 = scalar_lea.vmem [#allocation3], %s1499_s21  ;;  %s525_s24 = scalar_lea.vmem [#allocation2], %s1499_s21 }
  0x2a   :  { %275 = vmatpush.msrb.mxu1 %v1907_v24  ;;  %375 = vmatpush.msrb.mxu2 %v1867_v6  ;;  %s527_s25 = scalar_lea.vmem [#allocation2], %s2002_s23  ;;  %s682_s3 = scalar_lea.vmem [#allocation3], %s2002_s23 }
  0x2b   :  { %255 = vmatpush.msrb.mxu0 %v1910_v25  ;;  %396 = vmatpush.msrb.mxu3 %v1871_v7  ;;  %s1513_s4 = sld [smem:[#allocation6 + $0x4]] }
  0x2c   :  { %276 = vmatpush.msrb.mxu1 %v1914_v26  ;;  %376 = vmatpush.msrb.mxu2 %v1873_v10  ;;  %s2060_s9 = sld [smem:[#allocation7 + $0x4]] }
  0x2d   :  { %256 = vmatpush.msrb.mxu0 %v1918_v27  ;;  %1490 = vmatmul.msk.f32.vlgmr.msrb.gmra.mxu1 %vm115_vm1, %v170_v28  ;;  %s849_s27 = scalar_lea.vmem [#allocation3], %s1506_s26  ;;  %s704_s29 = scalar_lea.vmem [#allocation2], %s1506_s26 }
  0x2e   :  { %1489 = vmatmul.msk.f32.vlgmr.msrb.gmra.mxu0 %vm115_vm1, %v170_v28  ;;  %452 = vmatpush.msra.mxu1 %v1887_v17  ;;  %s706_s2 = scalar_lea.vmem [#allocation2], %s2035_s28  ;;  %s861_s30 = scalar_lea.vmem [#allocation3], %s2035_s28 }
  0x2f   :  { %432 = vmatpush.msra.mxu0 %v1894_v20  ;;  %397 = vmatpush.msrb.mxu3 %v1875_v11  ;;  %s2073_s14 = sld [smem:[#allocation6 + $0x5]] }
  0x30   :  { %453 = vmatpush.msra.mxu1 %v1898_v21  ;;  %377 = vmatpush.msrb.mxu2 %v1881_v14  ;;  %s2082_s15 = sld [smem:[#allocation7 + $0x5]] }
  0x31   :  { %433 = vmatpush.msra.mxu0 %v1903_v23  ;;  %398 = vmatpush.msrb.mxu3 %v1885_v16  ;;  %s1028_s5 = scalar_lea.vmem [#allocation3], %s1513_s4  ;;  %s883_s10 = scalar_lea.vmem [#allocation2], %s1513_s4 }
  0x32   :  { %454 = vmatpush.msra.mxu1 %v1907_v24  ;;  %378 = vmatpush.msrb.mxu2 %v1890_v19  ;;  %s885_s12 = scalar_lea.vmem [#allocation2], %s2060_s9  ;;  %s1040_s13 = scalar_lea.vmem [#allocation3], %s2060_s9 }
  0x33   :  { %434 = vmatpush.msra.mxu0 %v1910_v25  ;;  %574 = vmatpush.msra.mxu3 %v1865_v3  ;;  %s2103_s21 = sld [smem:[#allocation7 + $0x6]] }
  0x34   :  { %455 = vmatpush.msra.mxu1 %v1914_v26  ;;  %554 = vmatpush.msra.mxu2 %v1867_v6 }
  0x35   :  { %435 = vmatpush.msra.mxu0 %v1918_v27  ;;  %575 = vmatpush.msra.mxu3 %v1871_v7  ;;  %s1207_s1 = scalar_lea.vmem [#allocation3], %s2073_s14 }
  0x36   :  { %631 = vmatpush.msrb.mxu1 %v1887_v17  ;;  %555 = vmatpush.msra.mxu2 %v1873_v10  ;;  %s1064_s17 = scalar_lea.vmem [#allocation2], %s2082_s15 }
  0x37   :  { %611 = vmatpush.msrb.mxu0 %v1894_v20  ;;  %576 = vmatpush.msra.mxu3 %v1875_v11 }
  0x38   :  { %632 = vmatpush.msrb.mxu1 %v1898_v21  ;;  %556 = vmatpush.msra.mxu2 %v1881_v14 }
  0x39   :  { %612 = vmatpush.msrb.mxu0 %v1903_v23  ;;  %577 = vmatpush.msra.mxu3 %v1885_v16  ;;  %s1243_s23 = scalar_lea.vmem [#allocation2], %s2103_s21 }
  0x3a   :  { %633 = vmatpush.msrb.mxu1 %v1907_v24  ;;  %557 = vmatpush.msra.mxu2 %v1890_v19 }
  0x3b   :  { %613 = vmatpush.msrb.mxu0 %v1910_v25 }
  0x3c   :  { %634 = vmatpush.msrb.mxu1 %v1914_v26 }
  0x3d   :  { %614 = vmatpush.msrb.mxu0 %v1918_v27 }
  0x9a   :  { %v316_v57 = vpop.permute.xlu0 %315 }
  0xa1   :  { %v136_v32 = vpop.f32.mrf.mxu0  ;;  %v156_v33 = vpop.f32.mrf.mxu1 }
  0xa2   :  { %v137_v34 = vadd.f32 %v136_v32, %v111_v30  ;;  %v157_v35 = vadd.f32 %v156_v33, %v112_v31 }
  0xa4   :  { %159 = vst [vmem:[#allocation4] sm:$0x7f] %v137_v34 }
  0xa5   :  { %161 = vst.msk [vmem:[#allocation4 + $0x8] sm:$0x7f] %vm160_vm2, %v157_v35 }
  0xa9   :  { %v220_v36 = vpop.f32.mrf.mxu3 }
  0xaa   :  { %v225_v37 = vrot.slane %v220_v36, 7  ;;  %v200_v38 = vpop.f32.mrf.mxu2  ;;  %v278_v39 = vpop.f32.mrf.mxu1 }
  0xab   :  { %v283_v40 = vrot.slane %v278_v39, 7  ;;  %v258_v41 = vpop.f32.mrf.mxu0 }
  0xac   :  { %v171_v42 = vld [vmem:[#allocation4] ss:$8 sm:$0x3]  ;;  %v227_v43 = vsel %vm226_vm3, %v200_v38, %v225_v37  ;;  %v351_v36 = vld [vmem:[#allocation4 + $0x1] ss:$8 sm:$0x3] }
  0xad   :  { %v229_v44 = vadd.f32 %v227_v43, %v171_v42  ;;  %v284_v45 = vsel %vm226_vm3, %v258_v41, %v283_v40 }
  0xaf   :  { %v286_v46 = vadd.f32 %v284_v45, %v229_v44 }
  0xb1   :  { %v1491_v47 = vmul.f32 -1.442695, %v286_v46 }
  0xb3   :  { %1548 = vpow2.f32 %v1491_v47 }
  0xb9   :  { %v1549_v48 = vpop.eup %1548 }
  0xba   :  { %v290_v49 = vadd.f32 1.0, %v1549_v48 }
  0xbc   :  { %1550 = vrcp.f32 %v290_v49  ;;  %v302_v53 = vand.u32 2147483648, %v290_v49  ;;  %v300_v55 = vand.u32 2147483647, %v290_v49  ;;  %vm296_vm5 = vweird.f32 %v290_v49 }
  0xbe   :  { %v303_v58 = vor.u32 1.1754944e-38, %v302_v53  ;;  %vm301_vm7 = vcmp.eq.f32.partialorder %v300_v55, 8.507059e+37 }
  0xc2   :  { %v1551_v50 = vpop.eup %1550 }
  0xc3   :  { %v292_v51 = vmul.f32 %v1551_v50, %v290_v49  ;;  %vm297_vm4 = vweird.f32 %v1551_v50 }
  0xc4   :  { %vm298_vm6 = vmor %vm296_vm5, %vm297_vm4 }
  0xc5   :  { %v293_v52 = vsub.f32 1.0, %v292_v51 }
  0xc7   :  { %v294_v54 = vmul.f32 %v1551_v50, %v293_v52 }
  0xc9   :  { %v295_v56 = vadd.f32 %v1551_v50, %v294_v54 }
  0xcb   :  { %v299_v59 = vsel %vm298_vm6, %v1551_v50, %v295_v56 }
  0xcc   :  { %v304_v60 = vsel %vm301_vm7, %v303_v58, %v299_v59 }
  0xcd   :  { %1552 = vtanh.f32 %v304_v60  ;;  %v318_v61 = vmul.f32 %v316_v57, %v304_v60  ;;  %v327_v63 = vrot.slane %v304_v60, 1 }
  0xcf   :  { %320 = vrot.lane.b32.xlu1 %v318_v61, %s1794_s6  ;;  %v329_v5 = vmul.f32 %v327_v63, %v325_v0 }
  0xd3   :  { %v1553_v62 = vpop.eup %1552 }
  0xd4   :  { %308 = vrot.lane.b32.xlu0 %v1553_v62, %s1795_s0 }
 0x141   :  { %v321_v4 = vpop.permute.xlu1 %320 }
 0x146   :  { %v309_v1 = vpop.permute.xlu0 %308 }
 0x147   :  { %v311_v2 = vmul.f32 %v309_v1, %v304_v60 }
 0x149   :  { %v323_v8 = vadd.f32 %v321_v4, %v311_v2 }
 0x14b   :  { %v330_v9 = vadd.f32 %v329_v5, %v323_v8 }
 0x14d   :  { %1554 = vtanh.f32 %v330_v9  ;;  %343 = vst.msk [vmem:[#allocation3] sm:$0x1] %vm162_vm0, %v330_v9 }
 0x153   :  { %v1555_v12 = vpop.eup %1554 }
 0x154   :  { %333 = vrot.lane.b32.xlu1 %v1555_v12, %s1794_s6  ;;  %v492_v22 = vld [vmem:[%s491_s16] sm:$0x1]  ;;  %s1062_s16 = scalar_lea.vmem [#allocation2], %s2073_s14 }
 0x155   :  { %v504_v62 = vld [vmem:[%s503_s20] sm:$0x1] }
 0x1c6   :  { %v334_v13 = vpop.permute.xlu1 %333 }
 0x1c7   :  { %v336_v15 = vmul.f32 %v334_v13, %v304_v60 }
 0x1c9   :  { %v338_v18 = vperm.slane %v336_v15, 0 }
 0x1cb   :  { %339 = vrot.lane.b32.xlu2 %v338_v18, %s1793_s11 }
 0x1d3   :  { %494 = vrot.lane.b32.xlu2 %v492_v22, %s1793_s11 }
 0x225   :  { %v340_v28 = vpop.permute.xlu2 %339 }
 0x226   :  { %342 = vst.msk [vmem:[#allocation2] sm:$0x1] %vm162_vm0, %v340_v28 }
 0x22d   :  { %v347_v29 = vld [vmem:[%s346_s18] sm:$0x1]  ;;  %v495_v54 = vpop.permute.xlu2 %494  ;;  %s1219_s18 = scalar_lea.vmem [#allocation3], %s2082_s15 }
 0x22e   :  { %v349_v30 = vld [vmem:[%s348_s19] sm:$0x1]  ;;  %1494 = vmatmul.msk.f32.vlgmr.msrb.gmra.mxu2 %vm115_vm1, %v347_v29  ;;  %1495 = vmatmul.msk.f32.vlgmr.msrb.gmra.mxu3 %vm115_vm1, %v347_v29  ;;  %s2096_s19 = sld [smem:[#allocation6 + $0x6]] }
 0x22f   :  { %1496 = vmatmul.msk.f32.vlgmr.msra.gmra.mxu0 %vm115_vm1, %v349_v30  ;;  %1497 = vmatmul.msk.f32.vlgmr.msra.gmra.mxu1 %vm115_vm1, %v349_v30 }
 0x230   :  { %753 = vmatpush.msrb.mxu3 %v1865_v3  ;;  %733 = vmatpush.msrb.mxu2 %v1867_v6 }
 0x231   :  { %790 = vmatpush.msra.mxu0 %v1894_v20  ;;  %810 = vmatpush.msra.mxu1 %v1887_v17 }
 0x232   :  { %754 = vmatpush.msrb.mxu3 %v1871_v7  ;;  %734 = vmatpush.msrb.mxu2 %v1873_v10 }
 0x233   :  { %791 = vmatpush.msra.mxu0 %v1903_v23  ;;  %811 = vmatpush.msra.mxu1 %v1898_v21 }
 0x234   :  { %755 = vmatpush.msrb.mxu3 %v1875_v11  ;;  %735 = vmatpush.msrb.mxu2 %v1881_v14  ;;  %s1386_s20 = scalar_lea.vmem [#allocation3], %s2096_s19 }
 0x235   :  { %792 = vmatpush.msra.mxu0 %v1910_v25  ;;  %812 = vmatpush.msra.mxu1 %v1907_v24 }
 0x236   :  { %756 = vmatpush.msrb.mxu3 %v1885_v16  ;;  %736 = vmatpush.msrb.mxu2 %v1890_v19 }
 0x237   :  { %793 = vmatpush.msra.mxu0 %v1918_v27  ;;  %813 = vmatpush.msra.mxu1 %v1914_v26 }
 0x2ac   :  { %v457_v31 = vpop.f32.mrf.mxu1  ;;  %v437_v38 = vpop.f32.mrf.mxu0 }
 0x2ad   :  { %v462_v33 = vrot.slane %v457_v31, 7 }
 0x2af   :  { %v463_v40 = vsel %vm226_vm3, %v437_v38, %v462_v33 }
 0x2b1   :  { %v400_v32 = vpop.f32.mrf.mxu3  ;;  %v380_v35 = vpop.f32.mrf.mxu2 }
 0x2b2   :  { %v405_v34 = vrot.slane %v400_v32, 7 }
 0x2b4   :  { %v406_v37 = vsel %vm226_vm3, %v380_v35, %v405_v34 }
 0x2b5   :  { %v408_v39 = vadd.f32 %v406_v37, %v351_v36 }
 0x2b7   :  { %v465_v41 = vadd.f32 %v463_v40, %v408_v39 }
 0x2b9   :  { %v1498_v42 = vmul.f32 -1.442695, %v465_v41 }
 0x2bb   :  { %1556 = vpow2.f32 %v1498_v42 }
 0x2c1   :  { %v1557_v43 = vpop.eup %1556 }
 0x2c2   :  { %v469_v44 = vadd.f32 1.0, %v1557_v43 }
 0x2c4   :  { %1558 = vrcp.f32 %v469_v44  ;;  %v481_v48 = vand.u32 2147483648, %v469_v44  ;;  %v479_v50 = vand.u32 2147483647, %v469_v44  ;;  %vm475_vm9 = vweird.f32 %v469_v44 }
 0x2c6   :  { %v482_v52 = vor.u32 1.1754944e-38, %v481_v48  ;;  %vm480_vm11 = vcmp.eq.f32.partialorder %v479_v50, 8.507059e+37 }
 0x2ca   :  { %v1559_v45 = vpop.eup %1558 }
 0x2cb   :  { %v471_v46 = vmul.f32 %v1559_v45, %v469_v44  ;;  %vm476_vm8 = vweird.f32 %v1559_v45 }
 0x2cc   :  { %vm477_vm10 = vmor %vm475_vm9, %vm476_vm8 }
 0x2cd   :  { %v472_v47 = vsub.f32 1.0, %v471_v46 }
 0x2cf   :  { %v473_v49 = vmul.f32 %v1559_v45, %v472_v47 }
 0x2d1   :  { %v474_v51 = vadd.f32 %v1559_v45, %v473_v49 }
 0x2d3   :  { %v478_v53 = vsel %vm477_vm10, %v1559_v45, %v474_v51 }
 0x2d4   :  { %v483_v55 = vsel %vm480_vm11, %v482_v52, %v478_v53 }
 0x2d5   :  { %v497_v56 = vmul.f32 %v495_v54, %v483_v55  ;;  %1560 = vtanh.f32 %v483_v55  ;;  %v506_v58 = vrot.slane %v483_v55, 1 }
 0x2d7   :  { %499 = vrot.lane.b32.xlu1 %v497_v56, %s1794_s6  ;;  %v508_v63 = vmul.f32 %v506_v58, %v504_v62 }
 0x2db   :  { %v1561_v57 = vpop.eup %1560 }
 0x2dc   :  { %487 = vrot.lane.b32.xlu0 %v1561_v57, %s1795_s0 }
 0x349   :  { %v500_v61 = vpop.permute.xlu1 %499 }
 0x34e   :  { %v488_v59 = vpop.permute.xlu0 %487 }
 0x34f   :  { %v490_v60 = vmul.f32 %v488_v59, %v483_v55 }
 0x351   :  { %v502_v0 = vadd.f32 %v500_v61, %v490_v60 }
 0x353   :  { %v509_v1 = vadd.f32 %v508_v63, %v502_v0 }
 0x355   :  { %1562 = vtanh.f32 %v509_v1  ;;  %522 = vst.msk [vmem:[#allocation3 + $0x1] sm:$0x1] %vm162_vm0, %v509_v1 }
 0x35b   :  { %v1563_v2 = vpop.eup %1562 }
 0x35c   :  { %512 = vrot.lane.b32.xlu2 %v1563_v2, %s1794_s6  ;;  %v671_v4 = vld [vmem:[%s670_s22] sm:$0x1]  ;;  %s1241_s22 = scalar_lea.vmem [#allocation2], %s2096_s19 }
 0x35d   :  { %673 = vrot.lane.b32.xlu1 %v671_v4, %s1793_s11  ;;  %v683_v50 = vld [vmem:[%s682_s3] sm:$0x1] }
 0x3b6   :  { %v513_v5 = vpop.permute.xlu2 %512 }
 0x3b7   :  { %v515_v8 = vmul.f32 %v513_v5, %v483_v55 }
 0x3b9   :  { %v517_v9 = vperm.slane %v515_v8, 0 }
 0x3bb   :  { %518 = vrot.lane.b32.xlu0 %v517_v9, %s1793_s11 }
 0x3cf   :  { %v674_v43 = vpop.permute.xlu1 %673 }
 0x42d   :  { %v519_v12 = vpop.permute.xlu0 %518 }
 0x42e   :  { %521 = vst.msk [vmem:[#allocation2 + $0x1] sm:$0x1] %vm162_vm0, %v519_v12 }
 0x435   :  { %v526_v13 = vld [vmem:[%s525_s24] sm:$0x1]  ;;  %s1398_s24 = scalar_lea.vmem [#allocation3], %s2103_s21 }
 0x436   :  { %v528_v15 = vld [vmem:[%s527_s25] sm:$0x1]  ;;  %1501 = vmatmul.msk.f32.vlgmr.msra.gmra.mxu2 %vm115_vm1, %v526_v13  ;;  %1502 = vmatmul.msk.f32.vlgmr.msra.gmra.mxu3 %vm115_vm1, %v526_v13 }
 0x437   :  { %1503 = vmatmul.msk.f32.vlgmr.msrb.gmra.mxu0 %vm115_vm1, %v528_v15  ;;  %1504 = vmatmul.msk.f32.vlgmr.msrb.gmra.mxu1 %vm115_vm1, %v528_v15 }
 0x438   :  { %932 = vmatpush.msra.mxu3 %v1865_v3  ;;  %912 = vmatpush.msra.mxu2 %v1867_v6 }
 0x439   :  { %969 = vmatpush.msrb.mxu0 %v1894_v20  ;;  %989 = vmatpush.msrb.mxu1 %v1887_v17 }
 0x43a   :  { %933 = vmatpush.msra.mxu3 %v1871_v7  ;;  %913 = vmatpush.msra.mxu2 %v1873_v10 }
 0x43b   :  { %970 = vmatpush.msrb.mxu0 %v1903_v23  ;;  %990 = vmatpush.msrb.mxu1 %v1898_v21 }
 0x43c   :  { %934 = vmatpush.msra.mxu3 %v1875_v11  ;;  %914 = vmatpush.msra.mxu2 %v1881_v14  ;;  %v530_v11 = vld [vmem:[#allocation4 + $0x2] ss:$8 sm:$0x3] }
 0x43d   :  { %971 = vmatpush.msrb.mxu0 %v1910_v25  ;;  %991 = vmatpush.msrb.mxu1 %v1907_v24 }
 0x43e   :  { %935 = vmatpush.msra.mxu3 %v1885_v16  ;;  %915 = vmatpush.msra.mxu2 %v1890_v19 }
 0x43f   :  { %972 = vmatpush.msrb.mxu0 %v1918_v27  ;;  %992 = vmatpush.msrb.mxu1 %v1914_v26 }
 0x4b4   :  { %v636_v3 = vpop.f32.mrf.mxu1  ;;  %v616_v28 = vpop.f32.mrf.mxu0 }
 0x4b5   :  { %v641_v7 = vrot.slane %v636_v3, 7 }
 0x4b7   :  { %v642_v30 = vsel %vm226_vm3, %v616_v28, %v641_v7 }
 0x4b9   :  { %v579_v6 = vpop.f32.mrf.mxu3  ;;  %v559_v18 = vpop.f32.mrf.mxu2 }
 0x4ba   :  { %v584_v10 = vrot.slane %v579_v6, 7 }
 0x4bc   :  { %v585_v22 = vsel %vm226_vm3, %v559_v18, %v584_v10 }
 0x4bd   :  { %v587_v29 = vadd.f32 %v585_v22, %v530_v11 }
 0x4bf   :  { %v644_v31 = vadd.f32 %v642_v30, %v587_v29 }
 0x4c1   :  { %v1505_v16 = vmul.f32 -1.442695, %v644_v31 }
 0x4c3   :  { %1564 = vpow2.f32 %v1505_v16 }
 0x4c9   :  { %v1565_v32 = vpop.eup %1564 }
 0x4ca   :  { %v648_v33 = vadd.f32 1.0, %v1565_v32 }
 0x4cc   :  { %1566 = vrcp.f32 %v648_v33  ;;  %v660_v37 = vand.u32 2147483648, %v648_v33  ;;  %v658_v39 = vand.u32 2147483647, %v648_v33  ;;  %vm654_vm13 = vweird.f32 %v648_v33 }
 0x4ce   :  { %v661_v41 = vor.u32 1.1754944e-38, %v660_v37  ;;  %vm659_vm15 = vcmp.eq.f32.partialorder %v658_v39, 8.507059e+37 }
 0x4d2   :  { %v1567_v34 = vpop.eup %1566 }
 0x4d3   :  { %v650_v35 = vmul.f32 %v1567_v34, %v648_v33  ;;  %vm655_vm12 = vweird.f32 %v1567_v34 }
 0x4d4   :  { %vm656_vm14 = vmor %vm654_vm13, %vm655_vm12 }
 0x4d5   :  { %v651_v36 = vsub.f32 1.0, %v650_v35 }
 0x4d7   :  { %v652_v38 = vmul.f32 %v1567_v34, %v651_v36 }
 0x4d9   :  { %v653_v40 = vadd.f32 %v1567_v34, %v652_v38 }
 0x4db   :  { %v657_v42 = vsel %vm656_vm14, %v1567_v34, %v653_v40 }
 0x4dc   :  { %v662_v44 = vsel %vm659_vm15, %v661_v41, %v657_v42 }
 0x4dd   :  { %v676_v45 = vmul.f32 %v674_v43, %v662_v44  ;;  %1568 = vtanh.f32 %v662_v44  ;;  %v685_v48 = vrot.slane %v662_v44, 1 }
 0x4df   :  { %678 = vrot.lane.b32.xlu0 %v676_v45, %s1794_s6  ;;  %v687_v52 = vmul.f32 %v685_v48, %v683_v50 }
 0x4e3   :  { %v1569_v46 = vpop.eup %1568 }
 0x4e4   :  { %666 = vrot.lane.b32.xlu2 %v1569_v46, %s1795_s0 }
 0x53e   :  { %v667_v47 = vpop.permute.xlu2 %666 }
 0x53f   :  { %v669_v49 = vmul.f32 %v667_v47, %v662_v44 }
 0x551   :  { %v679_v51 = vpop.permute.xlu0 %678 }
 0x552   :  { %v681_v53 = vadd.f32 %v679_v51, %v669_v49  ;;  %v888_v49 = vld [vmem:[#allocation4 + $0x4] ss:$8 sm:$0x3] }
 0x554   :  { %v688_v54 = vadd.f32 %v687_v52, %v681_v53 }
 0x556   :  { %1570 = vtanh.f32 %v688_v54  ;;  %701 = vst.msk [vmem:[#allocation3 + $0x2] sm:$0x1] %vm162_vm0, %v688_v54 }
 0x55c   :  { %v1571_v55 = vpop.eup %1570 }
 0x55d   :  { %691 = vrot.lane.b32.xlu1 %v1571_v55, %s1794_s6  ;;  %v850_v56 = vld [vmem:[%s849_s27] sm:$0x1]  ;;  %s1440_s27 = sshll.u32 %s2136_s8, 4  ;;  %s1441_s27 = int_to_ptr.hbm [resolvable:$true] %s1440_s27 }
 0x55e   :  { %852 = vrot.lane.b32.xlu0 %v850_v56, %s1793_s11  ;;  %v862_v32 = vld [vmem:[%s861_s30] sm:$0x1]  ;;  %s1429_s30 = sshll.u32 %s2135_s7, 4  ;;  %s1430_s30 = int_to_ptr.hbm [resolvable:$true] %s1429_s30 }
 0x5cf   :  { %v692_v57 = vpop.permute.xlu1 %691 }
 0x5d0   :  { %v694_v58 = vmul.f32 %v692_v57, %v662_v44  ;;  %v853_v18 = vpop.permute.xlu0 %852 }
 0x5d2   :  { %v696_v59 = vperm.slane %v694_v58, 0 }
 0x5d4   :  { %697 = vrot.lane.b32.xlu2 %v696_v59, %s1793_s11 }
 0x62e   :  { %v698_v60 = vpop.permute.xlu2 %697 }
 0x62f   :  { %700 = vst.msk [vmem:[#allocation2 + $0x2] sm:$0x1] %vm162_vm0, %v698_v60 }
 0x636   :  { %v705_v61 = vld [vmem:[%s704_s29] sm:$0x1] }
 0x637   :  { %v707_v62 = vld [vmem:[%s706_s2] sm:$0x1]  ;;  %1508 = vmatmul.msk.f32.vlgmr.msrb.gmra.mxu2 %vm115_vm1, %v705_v61  ;;  %1509 = vmatmul.msk.f32.vlgmr.msrb.gmra.mxu3 %vm115_vm1, %v705_v61 }
 0x638   :  { %1510 = vmatmul.msk.f32.vlgmr.msra.gmra.mxu0 %vm115_vm1, %v707_v62  ;;  %1511 = vmatmul.msk.f32.vlgmr.msra.gmra.mxu1 %vm115_vm1, %v707_v62 }
 0x639   :  { %1148 = vmatpush.msra.mxu0 %v1894_v20  ;;  %1168 = vmatpush.msra.mxu1 %v1887_v17  ;;  %v709_v20 = vld [vmem:[#allocation4 + $0x3] ss:$8 sm:$0x3] }
 0x63b   :  { %1149 = vmatpush.msra.mxu0 %v1903_v23  ;;  %1169 = vmatpush.msra.mxu1 %v1898_v21 }
 0x63d   :  { %1150 = vmatpush.msra.mxu0 %v1910_v25  ;;  %1170 = vmatpush.msra.mxu1 %v1907_v24 }
 0x63f   :  { %1151 = vmatpush.msra.mxu0 %v1918_v27  ;;  %1171 = vmatpush.msra.mxu1 %v1914_v26 }
 0x6b5   :  { %v815_v63 = vpop.f32.mrf.mxu1  ;;  %v795_v5 = vpop.f32.mrf.mxu0 }
 0x6b6   :  { %v820_v1 = vrot.slane %v815_v63, 7 }
 0x6b8   :  { %v821_v21 = vsel %vm226_vm3, %v795_v5, %v820_v1 }
 0x6ba   :  { %v758_v0 = vpop.f32.mrf.mxu3  ;;  %v738_v4 = vpop.f32.mrf.mxu2 }
 0x6bb   :  { %v763_v2 = vrot.slane %v758_v0, 7 }
 0x6bd   :  { %v764_v17 = vsel %vm226_vm3, %v738_v4, %v763_v2 }
 0x6be   :  { %v766_v23 = vadd.f32 %v764_v17, %v709_v20 }
 0x6c0   :  { %v823_v8 = vadd.f32 %v821_v21, %v766_v23 }
 0x6c2   :  { %v1512_v25 = vmul.f32 -1.442695, %v823_v8 }
 0x6c4   :  { %1572 = vpow2.f32 %v1512_v25 }
 0x6ca   :  { %v1573_v24 = vpop.eup %1572 }
 0x6cb   :  { %v827_v9 = vadd.f32 1.0, %v1573_v24 }
 0x6cd   :  { %1574 = vrcp.f32 %v827_v9  ;;  %v839_v13 = vand.u32 2147483648, %v827_v9  ;;  %v837_v3 = vand.u32 2147483647, %v827_v9  ;;  %vm833_vm4 = vweird.f32 %v827_v9 }
 0x6cf   :  { %v840_v7 = vor.u32 1.1754944e-38, %v839_v13  ;;  %vm838_vm6 = vcmp.eq.f32.partialorder %v837_v3, 8.507059e+37 }
 0x6d3   :  { %v1575_v27 = vpop.eup %1574 }
 0x6d4   :  { %v829_v26 = vmul.f32 %v1575_v27, %v827_v9  ;;  %vm834_vm2 = vweird.f32 %v1575_v27 }
 0x6d5   :  { %vm835_vm5 = vmor %vm833_vm4, %vm834_vm2 }
 0x6d6   :  { %v830_v12 = vsub.f32 1.0, %v829_v26 }
 0x6d8   :  { %v831_v15 = vmul.f32 %v1575_v27, %v830_v12 }
 0x6da   :  { %v832_v6 = vadd.f32 %v1575_v27, %v831_v15 }
 0x6dc   :  { %v836_v10 = vsel %vm835_vm5, %v1575_v27, %v832_v6 }
 0x6dd   :  { %v841_v11 = vsel %vm838_vm6, %v840_v7, %v836_v10  ;;  %v1075_v7 = vld [vmem:[#allocation13 + $0x38] sm:$0xff]  ;;  %v1074_v10 = vld [vmem:[#allocation13 + $0x30] sm:$0xff] }
 0x6de   :  { %v855_v22 = vmul.f32 %v853_v18, %v841_v11  ;;  %1576 = vtanh.f32 %v841_v11  ;;  %v864_v29 = vrot.slane %v841_v11, 1  ;;  %v1073_v18 = vld [vmem:[#allocation13 + $0x28] sm:$0xff]  ;;  %1111 = vmatpush.msrb.mxu3 %v1075_v7  ;;  %1091 = vmatpush.msrb.mxu2 %v1074_v10 }
 0x6e0   :  { %857 = vrot.lane.b32.xlu2 %v855_v22, %s1794_s6  ;;  %v866_v33 = vmul.f32 %v864_v29, %v862_v32  ;;  %v1071_v22 = vld [vmem:[#allocation13 + $0x18] sm:$0xff]  ;;  %1112 = vmatpush.msrb.mxu3 %v1073_v18 }
 0x6e2   :  { %1113 = vmatpush.msrb.mxu3 %v1071_v22 }
 0x6e4   :  { %v1577_v28 = vpop.eup %1576 }
 0x6e5   :  { %845 = vrot.lane.b32.xlu1 %v1577_v28, %s1795_s0  ;;  %v1069_v28 = vld [vmem:[#allocation13 + $0x8] sm:$0xff] }
 0x6e6   :  { %1114 = vmatpush.msrb.mxu3 %v1069_v28 }
 0x73a   :  { %v858_v16 = vpop.permute.xlu2 %857 }
 0x757   :  { %v846_v30 = vpop.permute.xlu1 %845 }
 0x758   :  { %v848_v31 = vmul.f32 %v846_v30, %v841_v11 }
 0x75a   :  { %v860_v34 = vadd.f32 %v858_v16, %v848_v31 }
 0x75c   :  { %v867_v35 = vadd.f32 %v866_v33, %v860_v34  ;;  %v1067_v34 = vld [vmem:[#allocation4 + $0x5] ss:$8 sm:$0x3] }
 0x75e   :  { %1578 = vtanh.f32 %v867_v35  ;;  %880 = vst.msk [vmem:[#allocation3 + $0x3] sm:$0x1] %vm162_vm0, %v867_v35 }
 0x764   :  { %v1579_v36 = vpop.eup %1578 }
 0x765   :  { %870 = vrot.lane.b32.xlu0 %v1579_v36, %s1794_s6  ;;  %v1029_v37 = vld [vmem:[%s1028_s5] sm:$0x1] }
 0x766   :  { %1031 = vrot.lane.b32.xlu2 %v1029_v37, %s1793_s11  ;;  %v1041_v24 = vld [vmem:[%s1040_s13] sm:$0x1] }
 0x7c0   :  { %v1032_v4 = vpop.permute.xlu2 %1031 }
 0x7d7   :  { %v871_v38 = vpop.permute.xlu0 %870 }
 0x7d8   :  { %v873_v39 = vmul.f32 %v871_v38, %v841_v11  ;;  %v1072_v11 = vld [vmem:[#allocation13 + $0x20] sm:$0xff] }
 0x7d9   :  { %1092 = vmatpush.msrb.mxu2 %v1072_v11 }
 0x7da   :  { %v875_v40 = vperm.slane %v873_v39, 0 }
 0x7db   :  { %1093 = vmatpush.msrb.mxu2 %v1881_v14 }
 0x7dc   :  { %876 = vrot.lane.b32.xlu1 %v875_v40, %s1793_s11 }
 0x7dd   :  { %1094 = vmatpush.msrb.mxu2 %v1890_v19 }
 0x84e   :  { %v877_v41 = vpop.permute.xlu1 %876 }
 0x84f   :  { %879 = vst.msk [vmem:[#allocation2 + $0x3] sm:$0x1] %vm162_vm0, %v877_v41 }
 0x856   :  { %v884_v42 = vld [vmem:[%s883_s10] sm:$0x1] }
 0x857   :  { %v886_v43 = vld [vmem:[%s885_s12] sm:$0x1]  ;;  %1515 = vmatmul.msk.f32.vlgmr.msra.gmra.mxu2 %vm115_vm1, %v884_v42  ;;  %1516 = vmatmul.msk.f32.vlgmr.msra.gmra.mxu3 %vm115_vm1, %v884_v42 }
 0x858   :  { %1517 = vmatmul.msk.f32.vlgmr.msrb.gmra.mxu0 %vm115_vm1, %v886_v43  ;;  %1518 = vmatmul.msk.f32.vlgmr.msrb.gmra.mxu1 %vm115_vm1, %v886_v43 }
 0x859   :  { %1290 = vmatpush.msra.mxu3 %v1075_v7  ;;  %1270 = vmatpush.msra.mxu2 %v1074_v10 }
 0x85b   :  { %1291 = vmatpush.msra.mxu3 %v1073_v18  ;;  %1271 = vmatpush.msra.mxu2 %v1072_v11  ;;  %v1246_v11 = vld [vmem:[#allocation4 + $0x6] ss:$8 sm:$0x3] }
 0x85d   :  { %1292 = vmatpush.msra.mxu3 %v1071_v22 }
 0x85f   :  { %1293 = vmatpush.msra.mxu3 %v1069_v28 }
 0x8d5   :  { %v994_v44 = vpop.f32.mrf.mxu1  ;;  %v974_v51 = vpop.f32.mrf.mxu0 }
 0x8d6   :  { %v999_v46 = vrot.slane %v994_v44, 7 }
 0x8d8   :  { %v1000_v53 = vsel %vm226_vm3, %v974_v51, %v999_v46 }
 0x8da   :  { %v937_v45 = vpop.f32.mrf.mxu3  ;;  %v917_v48 = vpop.f32.mrf.mxu2 }
 0x8db   :  { %v942_v47 = vrot.slane %v937_v45, 7 }
 0x8dd   :  { %v943_v50 = vsel %vm226_vm3, %v917_v48, %v942_v47 }
 0x8de   :  { %v945_v52 = vadd.f32 %v943_v50, %v888_v49 }
 0x8e0   :  { %v1002_v54 = vadd.f32 %v1000_v53, %v945_v52 }
 0x8e2   :  { %v1519_v55 = vmul.f32 -1.442695, %v1002_v54 }
 0x8e4   :  { %1580 = vpow2.f32 %v1519_v55 }
 0x8ea   :  { %v1581_v56 = vpop.eup %1580 }
 0x8eb   :  { %v1006_v57 = vadd.f32 1.0, %v1581_v56 }
 0x8ed   :  { %1582 = vrcp.f32 %v1006_v57  ;;  %v1018_v61 = vand.u32 2147483648, %v1006_v57  ;;  %v1016_v63 = vand.u32 2147483647, %v1006_v57  ;;  %vm1012_vm8 = vweird.f32 %v1006_v57 }
 0x8ef   :  { %v1019_v1 = vor.u32 1.1754944e-38, %v1018_v61  ;;  %vm1017_vm10 = vcmp.eq.f32.partialorder %v1016_v63, 8.507059e+37 }
 0x8f3   :  { %v1583_v58 = vpop.eup %1582 }
 0x8f4   :  { %v1008_v59 = vmul.f32 %v1583_v58, %v1006_v57  ;;  %vm1013_vm7 = vweird.f32 %v1583_v58 }
 0x8f5   :  { %vm1014_vm9 = vmor %vm1012_vm8, %vm1013_vm7 }
 0x8f6   :  { %v1009_v60 = vsub.f32 1.0, %v1008_v59 }
 0x8f8   :  { %v1010_v62 = vmul.f32 %v1583_v58, %v1009_v60 }
 0x8fa   :  { %v1011_v0 = vadd.f32 %v1583_v58, %v1010_v62 }
 0x8fc   :  { %v1015_v2 = vsel %vm1014_vm9, %v1583_v58, %v1011_v0 }
 0x8fd   :  { %v1020_v20 = vsel %vm1017_vm10, %v1019_v1, %v1015_v2 }
 0x8fe   :  { %v1034_v17 = vmul.f32 %v1032_v4, %v1020_v20  ;;  %1584 = vtanh.f32 %v1020_v20  ;;  %v1043_v23 = vrot.slane %v1020_v20, 1 }
 0x900   :  { %1036 = vrot.lane.b32.xlu1 %v1034_v17, %s1794_s6  ;;  %v1045_v9 = vmul.f32 %v1043_v23, %v1041_v24  ;;  %v1310_v17 = vld [vmem:[#allocation14 + $0x30] sm:$0xff]  ;;  %v1308_v23 = vld [vmem:[#allocation14 + $0x20] sm:$0xff]  ;;  %v1307_v24 = vld [vmem:[#allocation14 + $0x18] sm:$0xff] }
 0x901   :  { %1327 = vmatpush.msrb.mxu0 %v1310_v17 }
 0x903   :  { %1328 = vmatpush.msrb.mxu0 %v1308_v23 }
 0x904   :  { %v1585_v5 = vpop.eup %1584 }
 0x905   :  { %1024 = vrot.lane.b32.xlu0 %v1585_v5, %s1795_s0  ;;  %v1311_v5 = vld [vmem:[#allocation14 + $0x38] sm:$0xff] }
 0x906   :  { %1347 = vmatpush.msrb.mxu1 %v1311_v5 }
 0x972   :  { %v1037_v25 = vpop.permute.xlu1 %1036 }
 0x977   :  { %v1025_v21 = vpop.permute.xlu0 %1024 }
 0x978   :  { %v1027_v8 = vmul.f32 %v1025_v21, %v1020_v20  ;;  %v1309_v21 = vld [vmem:[#allocation14 + $0x28] sm:$0xff] }
 0x979   :  { %1348 = vmatpush.msrb.mxu1 %v1309_v21 }
 0x97a   :  { %v1039_v27 = vadd.f32 %v1037_v25, %v1027_v8  ;;  %v1249_v8 = vld [vmem:[#allocation13 + $0x10] sm:$0xff] }
 0x97b   :  { %1272 = vmatpush.msra.mxu2 %v1249_v8  ;;  %v1306_v25 = vld [vmem:[#allocation14 + $0x10] sm:$0xff]  ;;  %1349 = vmatpush.msrb.mxu1 %v1307_v24 }
 0x97c   :  { %v1046_v26 = vadd.f32 %v1045_v9, %v1039_v27  ;;  %v1247_v9 = vld [vmem:[#allocation13] sm:$0xff]  ;;  %1329 = vmatpush.msrb.mxu0 %v1306_v25 }
 0x97d   :  { %1273 = vmatpush.msra.mxu2 %v1247_v9  ;;  %v1304_v27 = vld [vmem:[#allocation14] sm:$0xff] }
 0x97e   :  { %1586 = vtanh.f32 %v1046_v26  ;;  %1059 = vst.msk [vmem:[#allocation3 + $0x4] sm:$0x1] %vm162_vm0, %v1046_v26  ;;  %v1305_v26 = vld [vmem:[#allocation14 + $0x8] sm:$0xff]  ;;  %1330 = vmatpush.msrb.mxu0 %v1304_v27 }
 0x97f   :  { %1350 = vmatpush.msrb.mxu1 %v1305_v26 }
 0x984   :  { %v1587_v12 = vpop.eup %1586 }
 0x985   :  { %1049 = vrot.lane.b32.xlu2 %v1587_v12, %s1794_s6  ;;  %v1208_v13 = vld [vmem:[%s1207_s1] sm:$0x1] }
 0x986   :  { %1210 = vrot.lane.b32.xlu1 %v1208_v13, %s1793_s11  ;;  %v1220_v59 = vld [vmem:[%s1219_s18] sm:$0x1] }
 0x9df   :  { %v1050_v15 = vpop.permute.xlu2 %1049 }
 0x9e0   :  { %v1052_v3 = vmul.f32 %v1050_v15, %v1020_v20 }
 0x9e2   :  { %v1054_v6 = vperm.slane %v1052_v3, 0 }
 0x9e4   :  { %1055 = vrot.lane.b32.xlu0 %v1054_v6, %s1793_s11 }
 0x9f8   :  { %v1211_v52 = vpop.permute.xlu1 %1210 }
 0xa56   :  { %v1056_v29 = vpop.permute.xlu0 %1055 }
 0xa57   :  { %1058 = vst.msk [vmem:[#allocation2 + $0x4] sm:$0x1] %vm162_vm0, %v1056_v29 }
 0xa5e   :  { %v1063_v30 = vld [vmem:[%s1062_s16] sm:$0x1] }
 0xa5f   :  { %v1065_v31 = vld [vmem:[%s1064_s17] sm:$0x1]  ;;  %1522 = vmatmul.msk.f32.vlgmr.msrb.gmra.mxu2 %vm115_vm1, %v1063_v30  ;;  %1523 = vmatmul.msk.f32.vlgmr.msrb.gmra.mxu3 %vm115_vm1, %v1063_v30 }
 0xa60   :  { %1524 = vmatmul.msk.f32.vlgmr.msra.gmra.mxu0 %vm115_vm1, %v1065_v31  ;;  %1525 = vmatmul.msk.f32.vlgmr.msra.gmra.mxu1 %vm115_vm1, %v1065_v31 }
 0xadd   :  { %v1173_v14 = vpop.f32.mrf.mxu1  ;;  %v1153_v36 = vpop.f32.mrf.mxu0 }
 0xade   :  { %v1178_v16 = vrot.slane %v1173_v14, 7 }
 0xae0   :  { %v1179_v38 = vsel %vm226_vm3, %v1153_v36, %v1178_v16 }
 0xae2   :  { %v1116_v19 = vpop.f32.mrf.mxu3  ;;  %v1096_v33 = vpop.f32.mrf.mxu2 }
 0xae3   :  { %v1121_v32 = vrot.slane %v1116_v19, 7 }
 0xae5   :  { %v1122_v35 = vsel %vm226_vm3, %v1096_v33, %v1121_v32 }
 0xae6   :  { %v1124_v37 = vadd.f32 %v1122_v35, %v1067_v34 }
 0xae8   :  { %v1181_v39 = vadd.f32 %v1179_v38, %v1124_v37 }
 0xaea   :  { %v1526_v40 = vmul.f32 -1.442695, %v1181_v39 }
 0xaec   :  { %1588 = vpow2.f32 %v1526_v40 }
 0xaf2   :  { %v1589_v41 = vpop.eup %1588 }
 0xaf3   :  { %v1185_v42 = vadd.f32 1.0, %v1589_v41 }
 0xaf5   :  { %1590 = vrcp.f32 %v1185_v42  ;;  %v1197_v46 = vand.u32 2147483648, %v1185_v42  ;;  %v1195_v48 = vand.u32 2147483647, %v1185_v42  ;;  %vm1191_vm12 = vweird.f32 %v1185_v42 }
 0xaf7   :  { %v1198_v50 = vor.u32 1.1754944e-38, %v1197_v46  ;;  %vm1196_vm14 = vcmp.eq.f32.partialorder %v1195_v48, 8.507059e+37 }
 0xafb   :  { %v1591_v43 = vpop.eup %1590 }
 0xafc   :  { %v1187_v44 = vmul.f32 %v1591_v43, %v1185_v42  ;;  %vm1192_vm11 = vweird.f32 %v1591_v43 }
 0xafd   :  { %vm1193_vm13 = vmor %vm1191_vm12, %vm1192_vm11 }
 0xafe   :  { %v1188_v45 = vsub.f32 1.0, %v1187_v44 }
 0xb00   :  { %v1189_v47 = vmul.f32 %v1591_v43, %v1188_v45 }
 0xb02   :  { %v1190_v49 = vadd.f32 %v1591_v43, %v1189_v47 }
 0xb04   :  { %v1194_v51 = vsel %vm1193_vm13, %v1591_v43, %v1190_v49 }
 0xb05   :  { %v1199_v53 = vsel %vm1196_vm14, %v1198_v50, %v1194_v51 }
 0xb06   :  { %v1213_v54 = vmul.f32 %v1211_v52, %v1199_v53  ;;  %1592 = vtanh.f32 %v1199_v53  ;;  %v1222_v57 = vrot.slane %v1199_v53, 1 }
 0xb08   :  { %1215 = vrot.lane.b32.xlu0 %v1213_v54, %s1794_s6  ;;  %v1224_v61 = vmul.f32 %v1222_v57, %v1220_v59 }
 0xb0c   :  { %v1593_v55 = vpop.eup %1592 }
 0xb0d   :  { %1203 = vrot.lane.b32.xlu2 %v1593_v55, %s1795_s0 }
 0xb67   :  { %v1204_v56 = vpop.permute.xlu2 %1203 }
 0xb68   :  { %v1206_v58 = vmul.f32 %v1204_v56, %v1199_v53 }
 0xb7a   :  { %v1216_v60 = vpop.permute.xlu0 %1215 }
 0xb7b   :  { %v1218_v62 = vadd.f32 %v1216_v60, %v1206_v58 }
 0xb7d   :  { %v1225_v63 = vadd.f32 %v1224_v61, %v1218_v62 }
 0xb7f   :  { %1594 = vtanh.f32 %v1225_v63  ;;  %1238 = vst.msk [vmem:[#allocation3 + $0x5] sm:$0x1] %vm162_vm0, %v1225_v63 }
 0xb85   :  { %v1595_v0 = vpop.eup %1594 }
 0xb86   :  { %1228 = vrot.lane.b32.xlu1 %v1595_v0, %s1794_s6  ;;  %v1387_v1 = vld [vmem:[%s1386_s20] sm:$0x1] }
 0xb87   :  { %1389 = vrot.lane.b32.xlu0 %v1387_v1, %s1793_s11  ;;  %v1399_v49 = vld [vmem:[%s1398_s24] sm:$0x1] }
 0xbf8   :  { %v1229_v2 = vpop.permute.xlu1 %1228 }
 0xbf9   :  { %v1231_v4 = vmul.f32 %v1229_v2, %v1199_v53  ;;  %v1390_v41 = vpop.permute.xlu0 %1389 }
 0xbfb   :  { %v1233_v20 = vperm.slane %v1231_v4, 0 }
 0xbfd   :  { %1234 = vrot.lane.b32.xlu2 %v1233_v20, %s1793_s11 }
 0xc57   :  { %v1235_v12 = vpop.permute.xlu2 %1234 }
 0xc58   :  { %1237 = vst.msk [vmem:[#allocation2 + $0x5] sm:$0x1] %vm162_vm0, %v1235_v12 }
 0xc5f   :  { %v1242_v13 = vld [vmem:[%s1241_s22] sm:$0x1] }
 0xc60   :  { %v1244_v15 = vld [vmem:[%s1243_s23] sm:$0x1]  ;;  %1529 = vmatmul.msk.f32.vlgmr.msra.gmra.mxu2 %vm115_vm1, %v1242_v13  ;;  %1530 = vmatmul.msk.f32.vlgmr.msra.gmra.mxu3 %vm115_vm1, %v1242_v13 }
 0xc61   :  { %1531 = vmatmul.msk.f32.vlgmr.msrb.gmra.mxu0 %vm115_vm1, %v1244_v15  ;;  %1532 = vmatmul.msk.f32.vlgmr.msrb.gmra.mxu1 %vm115_vm1, %v1244_v15 }
 0xcde   :  { %v1352_v3 = vpop.f32.mrf.mxu1  ;;  %v1332_v28 = vpop.f32.mrf.mxu0 }
 0xcdf   :  { %v1357_v7 = vrot.slane %v1352_v3, 7 }
 0xce1   :  { %v1358_v30 = vsel %vm226_vm3, %v1332_v28, %v1357_v7 }
 0xce3   :  { %v1295_v6 = vpop.f32.mrf.mxu3  ;;  %v1275_v18 = vpop.f32.mrf.mxu2 }
 0xce4   :  { %v1300_v10 = vrot.slane %v1295_v6, 7 }
 0xce6   :  { %v1301_v22 = vsel %vm226_vm3, %v1275_v18, %v1300_v10 }
 0xce7   :  { %v1303_v29 = vadd.f32 %v1301_v22, %v1246_v11 }
 0xce9   :  { %v1360_v31 = vadd.f32 %v1358_v30, %v1303_v29 }
 0xceb   :  { %v1533_v14 = vmul.f32 -1.442695, %v1360_v31 }
 0xced   :  { %1596 = vpow2.f32 %v1533_v14 }
 0xcf3   :  { %v1597_v19 = vpop.eup %1596 }
 0xcf4   :  { %v1364_v16 = vadd.f32 1.0, %v1597_v19 }
 0xcf6   :  { %1598 = vrcp.f32 %v1364_v16  ;;  %v1376_v35 = vand.u32 2147483648, %v1364_v16  ;;  %v1374_v37 = vand.u32 2147483647, %v1364_v16  ;;  %vm1370_vm15 = vweird.f32 %v1364_v16 }
 0xcf8   :  { %v1377_v39 = vor.u32 1.1754944e-38, %v1376_v35  ;;  %vm1375_vm3 = vcmp.eq.f32.partialorder %v1374_v37, 8.507059e+37 }
 0xcfc   :  { %v1599_v32 = vpop.eup %1598 }
 0xcfd   :  { %v1366_v33 = vmul.f32 %v1599_v32, %v1364_v16  ;;  %vm1371_vm1 = vweird.f32 %v1599_v32 }
 0xcfe   :  { %vm1372_vm2 = vmor %vm1370_vm15, %vm1371_vm1 }
 0xcff   :  { %v1367_v34 = vsub.f32 1.0, %v1366_v33 }
 0xd01   :  { %v1368_v36 = vmul.f32 %v1599_v32, %v1367_v34 }
 0xd03   :  { %v1369_v38 = vadd.f32 %v1599_v32, %v1368_v36 }
 0xd05   :  { %v1373_v40 = vsel %vm1372_vm2, %v1599_v32, %v1369_v38 }
 0xd06   :  { %v1378_v42 = vsel %vm1375_vm3, %v1377_v39, %v1373_v40 }
 0xd07   :  { %v1392_v43 = vmul.f32 %v1390_v41, %v1378_v42  ;;  %1600 = vtanh.f32 %v1378_v42  ;;  %v1401_v45 = vrot.slane %v1378_v42, 1 }
 0xd09   :  { %1394 = vrot.lane.b32.xlu2 %v1392_v43, %s1794_s6  ;;  %v1403_v50 = vmul.f32 %v1401_v45, %v1399_v49 }
 0xd0d   :  { %v1601_v44 = vpop.eup %1600 }
 0xd0e   :  { %1382 = vrot.lane.b32.xlu1 %v1601_v44, %s1795_s0  ;;  %s1796_s0 = smov [#allocation17]  }
 0xd0f   :  { %s1438_s25 = sshll.u32 %s1796_s0, 4  ;;  %s1439_s25 = int_to_ptr.vmem [resolvable:$true] %s1438_s25 }
 0xd63   :  { %v1395_v48 = vpop.permute.xlu2 %1394 }
 0xd80   :  { %v1383_v46 = vpop.permute.xlu1 %1382 }
 0xd81   :  { %v1385_v47 = vmul.f32 %v1383_v46, %v1378_v42 }
 0xd83   :  { %v1397_v51 = vadd.f32 %v1395_v48, %v1385_v47 }
 0xd85   :  { %v1404_v52 = vadd.f32 %v1403_v50, %v1397_v51 }
 0xd87   :  { %1602 = vtanh.f32 %v1404_v52  ;;  %1417 = vst.msk [vmem:[#allocation3 + $0x6] sm:$0x1] %vm162_vm0, %v1404_v52 }
 0xd8d   :  { %v1603_v53 = vpop.eup %1602 }
 0xd8e   :  { %1407 = vrot.lane.b32.xlu0 %v1603_v53, %s1794_s6  ;;  %v1420_v54 = vld [vmem:[#allocation3 + $0x6] sm:$0x1]  ;;  %s1797_s6 = smov [#allocation16]  }
 0xd8f   :  { %1421 = vst.msk [vmem:[#allocation17] sm:$0x1] %vm162_vm0, %v1420_v54  ;;  %s1427_s28 = sshll.u32 %s1797_s6, 4  ;;  %s1428_s28 = int_to_ptr.vmem [resolvable:$true] %s1427_s28 }
 0xd90   :  { %1443 = dma.vmem_to_hbm [thread:$0]  %s1439_s25, 16, %s1441_s27, [#allocation18]  }
 0xe00   :  { %v1408_v55 = vpop.permute.xlu0 %1407 }
 0xe01   :  { %v1410_v56 = vmul.f32 %v1408_v55, %v1378_v42 }
 0xe03   :  { %v1412_v57 = vperm.slane %v1410_v56, 0 }
 0xe05   :  { %1413 = vrot.lane.b32.xlu1 %v1412_v57, %s1793_s11 }
 0xe77   :  { %v1414_v58 = vpop.permute.xlu1 %1413 }
 0xe78   :  { %1416 = vst.msk [vmem:[#allocation2 + $0x6] sm:$0x1] %vm162_vm0, %v1414_v58 }
 0xe7f   :  { %v1418_v59 = vld [vmem:[#allocation2 + $0x6] sm:$0x1] }
 0xe80   :  { %1419 = vst.msk [vmem:[#allocation16] sm:$0x1] %vm162_vm0, %v1418_v59 }
 0xe81   :  { %1432 = dma.vmem_to_hbm [thread:$0]  %s1428_s28, 16, %s1430_s30, [#allocation10]  }
 0xe82   :  { %1780 = dma.done.wait [#allocation10], 16  }
 0xe83   :  { %1781 = vsyncadd [#allocation10], 4294967280 }
 0xe84   :  { %1782 = dma.done.wait [#allocation18], 16  }
 0xe85   :  { %1783 = vsyncadd [#allocation18], 4294967280 }
 0xe86   :  { %1452 = vsyncpa [#allocation9], 1 }
 0xe87   :  { %1453 = vsyncpa [#allocation12], 1 }
 0xe88   :  { %1454 = vsyncpa [#allocation15], 1 }
 0xe89   :  { %1455 = vsyncpa [#allocation10], 1 }
 0xe8a   :  { %1456 = vsyncpa [#allocation18], 1 }

</bundles_post_ra>
